<compile_context>
chip_gen: v7x
topology: tpu7x:2x2x1
jax: 0.10.0
libtpu: 0.0.40
codegen_flags: <defaults>
</compile_context>

<pallas_src>
import functools

import jax
import jax.numpy as jnp
from jax.experimental import pallas as pl
from jax.experimental.pallas import tpu as pltpu

# ----------------------------- model dims ----------------------------------
VOCAB = 1000          # stand-in for len(uniquewords)
EMBED = 128           # nn.Embedding(.., 128)
HIDDEN = 128          # nn.LSTM(hidden_size=128)
FC1 = 256             # nn.Linear(128, 256)
NUM_CATEGORIES = 16   # stand-in for num_categories
SEQ = 8
BATCH = 2

B_PAD = 8             # pad batch to one full sublane
C_PAD = 128           # pad output classes to one full lane (lane-dense store)


# ------------------------------- kernel ------------------------------------
def net2_kernel(x_ref,        # (T, B_PAD, D)  embedded inputs, time-major
                wih_ref,      # (D, 4H)        = W_ih.T, gate order [i, f, g, o]
                whh_ref,      # (H, 4H)        = W_hh.T
                b_ref,        # (1, 4H)        = b_ih + b_hh
                w1_ref,       # (H, FC1)       = fc1.weight.T
                b1_ref,       # (1, FC1)
                w2_ref,       # (FC1, C_PAD)   = fc2.weight.T, zero-padded lanes
                b2_ref,       # (1, C_PAD)
                out_ref):     # (B_PAD, C_PAD)
    T, B, D = x_ref.shape
    H = HIDDEN

    # ---- hoisted input projection: one big MXU matmul for all timesteps ----
    x_all = x_ref[...].reshape(T * B, D)                         # (T*B, D)
    xw = (jnp.dot(x_all, wih_ref[...], preferred_element_type=jnp.float32)
          + b_ref[...])                                          # (T*B, 4H)

    # ---- unrolled recurrence: only h @ W_hh is on the serial chain ----------
    h = jnp.zeros((B, H), jnp.float32)
    c = jnp.zeros((B, H), jnp.float32)
    for t in range(T):                                           # static unroll, T=8
        gates = xw[t * B:(t + 1) * B, :] + jnp.dot(
            h, whh_ref[...], preferred_element_type=jnp.float32)  # (B, 4H)
        i_g = jax.nn.sigmoid(gates[:, 0 * H:1 * H])
        f_g = jax.nn.sigmoid(gates[:, 1 * H:2 * H])
        g_g = jnp.tanh(gates[:, 2 * H:3 * H])
        o_g = jax.nn.sigmoid(gates[:, 3 * H:4 * H])
        c = f_g * c + i_g * g_g
        h = o_g * jnp.tanh(c)                                    # output[:, -1, :] after last step

    # ---- head: FC1 -> ReLU -> FC2 -> sigmoid --------------------------------
    x1 = jnp.dot(h, w1_ref[...], preferred_element_type=jnp.float32) + b1_ref[...]
    x1 = jnp.maximum(x1, 0.0)                                    # ReLU
    x2 = jnp.dot(x1, w2_ref[...], preferred_element_type=jnp.float32) + b2_ref[...]
    out_ref[...] = jax.nn.sigmoid(x2)                            # torch.sigmoid (lane-dense store)


# ------------------------ one-time parameter prep ----------------------------
def prepare_kernel_params(p):
    """Transpose/fuse/pad weights ONCE so the per-call wrapper does no layout work."""
    w2_t = jnp.zeros((FC1, C_PAD), jnp.float32).at[:, :NUM_CATEGORIES].set(p["fc2_w"].T)
    b2 = jnp.zeros((1, C_PAD), jnp.float32).at[:, :NUM_CATEGORIES].set(p["fc2_b"])
    return {
        "embedding": p["embedding"].astype(jnp.float32),   # (VOCAB, D)
        "wih_t": p["w_ih"].T,                              # (D, 4H)
        "whh_t": p["w_hh"].T,                              # (H, 4H)
        "b": (p["b_ih"] + p["b_hh"])[None, :],             # (1, 4H)
        "w1_t": p["fc1_w"].T,                              # (H, FC1)
        "b1": p["fc1_b"][None, :],                         # (1, FC1)
        "w2_t": w2_t,                                      # (FC1, C_PAD)
        "b2": b2,                                          # (1, C_PAD)
    }


# ------------------------------- wrapper ------------------------------------
@jax.jit
def net2_forward(inp, kp):
    """inp: int32 token ids, shape (B, T). Returns (B, NUM_CATEGORIES) float32."""
    B, T = inp.shape
    # Gather time-major directly (no (B,T,D)->(T,B,D) activation transpose) and
    # pad the tiny id tensor (not the big embedded tensor) to a full sublane.
    ids_tm = jnp.pad(inp.T, ((0, 0), (0, B_PAD - B)))      # (T, B_PAD), pad ids = 0 (valid row)
    x_tm = kp["embedding"][ids_tm]                         # (T, B_PAD, D)  gather (glue)

    vmem = pl.BlockSpec(memory_space=pltpu.MemorySpace.VMEM)
    out_pad = pl.pallas_call(
        net2_kernel,
        out_shape=jax.ShapeDtypeStruct((B_PAD, C_PAD), jnp.float32),
        in_specs=[vmem] * 8,
        out_specs=vmem,
    )(x_tm, kp["wih_t"], kp["whh_t"], kp["b"],
      kp["w1_t"], kp["b1"], kp["w2_t"], kp["b2"])
    return out_pad[:B, :NUM_CATEGORIES]


# --------------------------- parameter init ---------------------------------
def init_params(key):
    ks = jax.random.split(key, 8)
    k = 1.0 / jnp.sqrt(HIDDEN)   # PyTorch-style uniform init bound

    def u(kk, shape, bound):
        return jax.random.uniform(kk, shape, jnp.float32, -bound, bound)

    return {
        "embedding": jax.random.normal(ks[0], (VOCAB, EMBED), jnp.float32),
        "w_ih": u(ks[1], (4 * HIDDEN, EMBED), k),        # gate order [i, f, g, o]
        "w_hh": u(ks[2], (4 * HIDDEN, HIDDEN), k),
        "b_ih": u(ks[3], (4 * HIDDEN,), k),
        "b_hh": u(ks[4], (4 * HIDDEN,), k),
        "fc1_w": u(ks[5], (FC1, HIDDEN), 1.0 / jnp.sqrt(HIDDEN)),
        "fc1_b": jnp.zeros((FC1,), jnp.float32),
        "fc2_w": u(ks[6], (NUM_CATEGORIES, FC1), 1.0 / jnp.sqrt(FC1)),
        "fc2_b": jnp.zeros((NUM_CATEGORIES,), jnp.float32),
    }


# ------------------------ pure-JAX reference check ---------------------------
def net2_ref(inp, params):
    emb = params["embedding"][inp].astype(jnp.float32)    # (B, T, D)
    B, T, _ = emb.shape
    wih_t = params["w_ih"].T
    whh_t = params["w_hh"].T
    b = params["b_ih"] + params["b_hh"]
    h = jnp.zeros((B, HIDDEN), jnp.float32)
    c = jnp.zeros((B, HIDDEN), jnp.float32)
    H = HIDDEN
    for t in range(T):
        g = emb[:, t, :] @ wih_t + h @ whh_t + b
        i_g = jax.nn.sigmoid(g[:, 0 * H:1 * H])
        f_g = jax.nn.sigmoid(g[:, 1 * H:2 * H])
        g_g = jnp.tanh(g[:, 2 * H:3 * H])
        o_g = jax.nn.sigmoid(g[:, 3 * H:4 * H])
        c = f_g * c + i_g * g_g
        h = o_g * jnp.tanh(c)
    x = jnp.maximum(h @ params["fc1_w"].T + params["fc1_b"], 0.0)
    x = x @ params["fc2_w"].T + params["fc2_b"]
    return jax.nn.sigmoid(x)


if __name__ == "__main__":
    key = jax.random.PRNGKey(0)
    pkey, ikey = jax.random.split(key)
    params = init_params(pkey)
    kparams = prepare_kernel_params(params)               # one-time layout prep
    inp = jax.random.randint(ikey, (BATCH, SEQ), 0, VOCAB, dtype=jnp.int32)

    out = net2_forward(inp, kparams)
    out = jax.block_until_ready(out)

    ref = net2_ref(inp, params)
    assert out.shape == (BATCH, NUM_CATEGORIES)
    assert jnp.allclose(out, ref, atol=1e-4, rtol=1e-4), "mismatch vs reference"
    print("KERNEL_OK")
</pallas_src>

<mosaic_0001>
module attributes {stable_mosaic.version = 11 : i64} {
  func.func @net2_kernel(%arg0: memref<8x8x128xf32, #tpu.memory_space<vmem>>, %arg1: memref<128x512xf32, #tpu.memory_space<vmem>>, %arg2: memref<128x512xf32, #tpu.memory_space<vmem>>, %arg3: memref<1x512xf32, #tpu.memory_space<vmem>>, %arg4: memref<128x256xf32, #tpu.memory_space<vmem>>, %arg5: memref<1x256xf32, #tpu.memory_space<vmem>>, %arg6: memref<256x128xf32, #tpu.memory_space<vmem>>, %arg7: memref<1x128xf32, #tpu.memory_space<vmem>>, %arg8: memref<8x128xf32, #tpu.memory_space<vmem>>) attributes {dimension_semantics = [], scalar_prefetch = 0 : i64, scratch_operands = 0 : i64, tpu.core_type = #tpu.core_type<tc>} {
    %c0 = arith.constant 0 : index
    %c0_0 = arith.constant 0 : index
    %c0_1 = arith.constant 0 : index
    %0 = vector.load %arg0[%c0, %c0_0, %c0_1] : memref<8x8x128xf32, #tpu.memory_space<vmem>>, vector<8x8x128xf32>
    %1 = vector.shape_cast %0 : vector<8x8x128xf32> to vector<64x128xf32>
    %c0_2 = arith.constant 0 : index
    %c0_3 = arith.constant 0 : index
    %2 = vector.load %arg1[%c0_2, %c0_3] : memref<128x512xf32, #tpu.memory_space<vmem>>, vector<128x512xf32>
    %cst = arith.constant dense<0.000000e+00> : vector<64x512xf32>
    %3 = tpu.matmul %1, %2, %cst {dimension_numbers = #tpu.dot_dimension_numbers<[1], [0], [0], [1], [0, 0, 1, 1], [], []>} : vector<64x128xf32>, vector<128x512xf32>, vector<64x512xf32> -> vector<64x512xf32>
    %c0_4 = arith.constant 0 : index
    %c0_5 = arith.constant 0 : index
    %4 = vector.load %arg3[%c0_4, %c0_5] : memref<1x512xf32, #tpu.memory_space<vmem>>, vector<1x512xf32>
    %5 = vector.broadcast %4 : vector<1x512xf32> to vector<64x512xf32>
    %6 = arith.addf %3, %5 : vector<64x512xf32>
    %cst_6 = arith.constant 0.000000e+00 : f32
    %7 = vector.broadcast %cst_6 : f32 to vector<8x128xf32>
    %cst_7 = arith.constant 0.000000e+00 : f32
    %8 = vector.broadcast %cst_7 : f32 to vector<8x128xf32>
    %9 = vector.extract_strided_slice %6 {offsets = [0, 0], sizes = [8, 512], strides = [1, 1]} : vector<64x512xf32> to vector<8x512xf32>
    %c0_8 = arith.constant 0 : index
    %c0_9 = arith.constant 0 : index
    %10 = vector.load %arg2[%c0_8, %c0_9] : memref<128x512xf32, #tpu.memory_space<vmem>>, vector<128x512xf32>
    %cst_10 = arith.constant dense<0.000000e+00> : vector<8x512xf32>
    %11 = tpu.matmul %7, %10, %cst_10 {dimension_numbers = #tpu.dot_dimension_numbers<[1], [0], [0], [1], [0, 0, 1, 1], [], []>} : vector<8x128xf32>, vector<128x512xf32>, vector<8x512xf32> -> vector<8x512xf32>
    %12 = arith.addf %9, %11 : vector<8x512xf32>
    %13 = vector.extract_strided_slice %12 {offsets = [0, 0], sizes = [8, 128], strides = [1, 1]} : vector<8x512xf32> to vector<8x128xf32>
    %14 = arith.negf %13 : vector<8x128xf32>
    %15 = math.exp %14 : vector<8x128xf32>
    %cst_11 = arith.constant 1.000000e+00 : f32
    %16 = vector.broadcast %cst_11 : f32 to vector<8x128xf32>
    %17 = arith.addf %16, %15 : vector<8x128xf32>
    %18 = arith.divf %16, %17 : vector<8x128xf32>
    %19 = vector.extract_strided_slice %12 {offsets = [0, 128], sizes = [8, 128], strides = [1, 1]} : vector<8x512xf32> to vector<8x128xf32>
    %20 = arith.negf %19 : vector<8x128xf32>
    %21 = math.exp %20 : vector<8x128xf32>
    %cst_12 = arith.constant 1.000000e+00 : f32
    %22 = vector.broadcast %cst_12 : f32 to vector<8x128xf32>
    %23 = arith.addf %22, %21 : vector<8x128xf32>
    %24 = arith.divf %22, %23 : vector<8x128xf32>
    %25 = vector.extract_strided_slice %12 {offsets = [0, 256], sizes = [8, 128], strides = [1, 1]} : vector<8x512xf32> to vector<8x128xf32>
    %26 = math.tanh %25 : vector<8x128xf32>
    %27 = vector.extract_strided_slice %12 {offsets = [0, 384], sizes = [8, 128], strides = [1, 1]} : vector<8x512xf32> to vector<8x128xf32>
    %28 = arith.negf %27 : vector<8x128xf32>
    %29 = math.exp %28 : vector<8x128xf32>
    %cst_13 = arith.constant 1.000000e+00 : f32
    %30 = vector.broadcast %cst_13 : f32 to vector<8x128xf32>
    %31 = arith.addf %30, %29 : vector<8x128xf32>
    %32 = arith.divf %30, %31 : vector<8x128xf32>
    %33 = arith.mulf %24, %8 : vector<8x128xf32>
    %34 = arith.mulf %18, %26 : vector<8x128xf32>
    %35 = arith.addf %33, %34 : vector<8x128xf32>
    %36 = math.tanh %35 : vector<8x128xf32>
    %37 = arith.mulf %32, %36 : vector<8x128xf32>
    %38 = vector.extract_strided_slice %6 {offsets = [8, 0], sizes = [8, 512], strides = [1, 1]} : vector<64x512xf32> to vector<8x512xf32>
    %c0_14 = arith.constant 0 : index
    %c0_15 = arith.constant 0 : index
    %39 = vector.load %arg2[%c0_14, %c0_15] : memref<128x512xf32, #tpu.memory_space<vmem>>, vector<128x512xf32>
    %cst_16 = arith.constant dense<0.000000e+00> : vector<8x512xf32>
    %40 = tpu.matmul %37, %39, %cst_16 {dimension_numbers = #tpu.dot_dimension_numbers<[1], [0], [0], [1], [0, 0, 1, 1], [], []>} : vector<8x128xf32>, vector<128x512xf32>, vector<8x512xf32> -> vector<8x512xf32>
    %41 = arith.addf %38, %40 : vector<8x512xf32>
    %42 = vector.extract_strided_slice %41 {offsets = [0, 0], sizes = [8, 128], strides = [1, 1]} : vector<8x512xf32> to vector<8x128xf32>
    %43 = arith.negf %42 : vector<8x128xf32>
    %44 = math.exp %43 : vector<8x128xf32>
    %cst_17 = arith.constant 1.000000e+00 : f32
    %45 = vector.broadcast %cst_17 : f32 to vector<8x128xf32>
    %46 = arith.addf %45, %44 : vector<8x128xf32>
    %47 = arith.divf %45, %46 : vector<8x128xf32>
    %48 = vector.extract_strided_slice %41 {offsets = [0, 128], sizes = [8, 128], strides = [1, 1]} : vector<8x512xf32> to vector<8x128xf32>
    %49 = arith.negf %48 : vector<8x128xf32>
    %50 = math.exp %49 : vector<8x128xf32>
    %cst_18 = arith.constant 1.000000e+00 : f32
    %51 = vector.broadcast %cst_18 : f32 to vector<8x128xf32>
    %52 = arith.addf %51, %50 : vector<8x128xf32>
    %53 = arith.divf %51, %52 : vector<8x128xf32>
    %54 = vector.extract_strided_slice %41 {offsets = [0, 256], sizes = [8, 128], strides = [1, 1]} : vector<8x512xf32> to vector<8x128xf32>
    %55 = math.tanh %54 : vector<8x128xf32>
    %56 = vector.extract_strided_slice %41 {offsets = [0, 384], sizes = [8, 128], strides = [1, 1]} : vector<8x512xf32> to vector<8x128xf32>
    %57 = arith.negf %56 : vector<8x128xf32>
    %58 = math.exp %57 : vector<8x128xf32>
    %cst_19 = arith.constant 1.000000e+00 : f32
    %59 = vector.broadcast %cst_19 : f32 to vector<8x128xf32>
    %60 = arith.addf %59, %58 : vector<8x128xf32>
    %61 = arith.divf %59, %60 : vector<8x128xf32>
    %62 = arith.mulf %53, %35 : vector<8x128xf32>
    %63 = arith.mulf %47, %55 : vector<8x128xf32>
    %64 = arith.addf %62, %63 : vector<8x128xf32>
    %65 = math.tanh %64 : vector<8x128xf32>
    %66 = arith.mulf %61, %65 : vector<8x128xf32>
    %67 = vector.extract_strided_slice %6 {offsets = [16, 0], sizes = [8, 512], strides = [1, 1]} : vector<64x512xf32> to vector<8x512xf32>
    %c0_20 = arith.constant 0 : index
    %c0_21 = arith.constant 0 : index
    %68 = vector.load %arg2[%c0_20, %c0_21] : memref<128x512xf32, #tpu.memory_space<vmem>>, vector<128x512xf32>
    %cst_22 = arith.constant dense<0.000000e+00> : vector<8x512xf32>
    %69 = tpu.matmul %66, %68, %cst_22 {dimension_numbers = #tpu.dot_dimension_numbers<[1], [0], [0], [1], [0, 0, 1, 1], [], []>} : vector<8x128xf32>, vector<128x512xf32>, vector<8x512xf32> -> vector<8x512xf32>
    %70 = arith.addf %67, %69 : vector<8x512xf32>
    %71 = vector.extract_strided_slice %70 {offsets = [0, 0], sizes = [8, 128], strides = [1, 1]} : vector<8x512xf32> to vector<8x128xf32>
    %72 = arith.negf %71 : vector<8x128xf32>
    %73 = math.exp %72 : vector<8x128xf32>
    %cst_23 = arith.constant 1.000000e+00 : f32
    %74 = vector.broadcast %cst_23 : f32 to vector<8x128xf32>
    %75 = arith.addf %74, %73 : vector<8x128xf32>
    %76 = arith.divf %74, %75 : vector<8x128xf32>
    %77 = vector.extract_strided_slice %70 {offsets = [0, 128], sizes = [8, 128], strides = [1, 1]} : vector<8x512xf32> to vector<8x128xf32>
    %78 = arith.negf %77 : vector<8x128xf32>
    %79 = math.exp %78 : vector<8x128xf32>
    %cst_24 = arith.constant 1.000000e+00 : f32
    %80 = vector.broadcast %cst_24 : f32 to vector<8x128xf32>
    %81 = arith.addf %80, %79 : vector<8x128xf32>
    %82 = arith.divf %80, %81 : vector<8x128xf32>
    %83 = vector.extract_strided_slice %70 {offsets = [0, 256], sizes = [8, 128], strides = [1, 1]} : vector<8x512xf32> to vector<8x128xf32>
    %84 = math.tanh %83 : vector<8x128xf32>
    %85 = vector.extract_strided_slice %70 {offsets = [0, 384], sizes = [8, 128], strides = [1, 1]} : vector<8x512xf32> to vector<8x128xf32>
    %86 = arith.negf %85 : vector<8x128xf32>
    %87 = math.exp %86 : vector<8x128xf32>
    %cst_25 = arith.constant 1.000000e+00 : f32
    %88 = vector.broadcast %cst_25 : f32 to vector<8x128xf32>
    %89 = arith.addf %88, %87 : vector<8x128xf32>
    %90 = arith.divf %88, %89 : vector<8x128xf32>
    %91 = arith.mulf %82, %64 : vector<8x128xf32>
    %92 = arith.mulf %76, %84 : vector<8x128xf32>
    %93 = arith.addf %91, %92 : vector<8x128xf32>
    %94 = math.tanh %93 : vector<8x128xf32>
    %95 = arith.mulf %90, %94 : vector<8x128xf32>
    %96 = vector.extract_strided_slice %6 {offsets = [24, 0], sizes = [8, 512], strides = [1, 1]} : vector<64x512xf32> to vector<8x512xf32>
    %c0_26 = arith.constant 0 : index
    %c0_27 = arith.constant 0 : index
    %97 = vector.load %arg2[%c0_26, %c0_27] : memref<128x512xf32, #tpu.memory_space<vmem>>, vector<128x512xf32>
    %cst_28 = arith.constant dense<0.000000e+00> : vector<8x512xf32>
    %98 = tpu.matmul %95, %97, %cst_28 {dimension_numbers = #tpu.dot_dimension_numbers<[1], [0], [0], [1], [0, 0, 1, 1], [], []>} : vector<8x128xf32>, vector<128x512xf32>, vector<8x512xf32> -> vector<8x512xf32>
    %99 = arith.addf %96, %98 : vector<8x512xf32>
    %100 = vector.extract_strided_slice %99 {offsets = [0, 0], sizes = [8, 128], strides = [1, 1]} : vector<8x512xf32> to vector<8x128xf32>
    %101 = arith.negf %100 : vector<8x128xf32>
    %102 = math.exp %101 : vector<8x128xf32>
    %cst_29 = arith.constant 1.000000e+00 : f32
    %103 = vector.broadcast %cst_29 : f32 to vector<8x128xf32>
    %104 = arith.addf %103, %102 : vector<8x128xf32>
    %105 = arith.divf %103, %104 : vector<8x128xf32>
    %106 = vector.extract_strided_slice %99 {offsets = [0, 128], sizes = [8, 128], strides = [1, 1]} : vector<8x512xf32> to vector<8x128xf32>
    %107 = arith.negf %106 : vector<8x128xf32>
    %108 = math.exp %107 : vector<8x128xf32>
    %cst_30 = arith.constant 1.000000e+00 : f32
    %109 = vector.broadcast %cst_30 : f32 to vector<8x128xf32>
    %110 = arith.addf %109, %108 : vector<8x128xf32>
    %111 = arith.divf %109, %110 : vector<8x128xf32>
    %112 = vector.extract_strided_slice %99 {offsets = [0, 256], sizes = [8, 128], strides = [1, 1]} : vector<8x512xf32> to vector<8x128xf32>
    %113 = math.tanh %112 : vector<8x128xf32>
    %114 = vector.extract_strided_slice %99 {offsets = [0, 384], sizes = [8, 128], strides = [1, 1]} : vector<8x512xf32> to vector<8x128xf32>
    %115 = arith.negf %114 : vector<8x128xf32>
    %116 = math.exp %115 : vector<8x128xf32>
    %cst_31 = arith.constant 1.000000e+00 : f32
    %117 = vector.broadcast %cst_31 : f32 to vector<8x128xf32>
    %118 = arith.addf %117, %116 : vector<8x128xf32>
    %119 = arith.divf %117, %118 : vector<8x128xf32>
    %120 = arith.mulf %111, %93 : vector<8x128xf32>
    %121 = arith.mulf %105, %113 : vector<8x128xf32>
    %122 = arith.addf %120, %121 : vector<8x128xf32>
    %123 = math.tanh %122 : vector<8x128xf32>
    %124 = arith.mulf %119, %123 : vector<8x128xf32>
    %125 = vector.extract_strided_slice %6 {offsets = [32, 0], sizes = [8, 512], strides = [1, 1]} : vector<64x512xf32> to vector<8x512xf32>
    %c0_32 = arith.constant 0 : index
    %c0_33 = arith.constant 0 : index
    %126 = vector.load %arg2[%c0_32, %c0_33] : memref<128x512xf32, #tpu.memory_space<vmem>>, vector<128x512xf32>
    %cst_34 = arith.constant dense<0.000000e+00> : vector<8x512xf32>
    %127 = tpu.matmul %124, %126, %cst_34 {dimension_numbers = #tpu.dot_dimension_numbers<[1], [0], [0], [1], [0, 0, 1, 1], [], []>} : vector<8x128xf32>, vector<128x512xf32>, vector<8x512xf32> -> vector<8x512xf32>
    %128 = arith.addf %125, %127 : vector<8x512xf32>
    %129 = vector.extract_strided_slice %128 {offsets = [0, 0], sizes = [8, 128], strides = [1, 1]} : vector<8x512xf32> to vector<8x128xf32>
    %130 = arith.negf %129 : vector<8x128xf32>
    %131 = math.exp %130 : vector<8x128xf32>
    %cst_35 = arith.constant 1.000000e+00 : f32
    %132 = vector.broadcast %cst_35 : f32 to vector<8x128xf32>
    %133 = arith.addf %132, %131 : vector<8x128xf32>
    %134 = arith.divf %132, %133 : vector<8x128xf32>
    %135 = vector.extract_strided_slice %128 {offsets = [0, 128], sizes = [8, 128], strides = [1, 1]} : vector<8x512xf32> to vector<8x128xf32>
    %136 = arith.negf %135 : vector<8x128xf32>
    %137 = math.exp %136 : vector<8x128xf32>
    %cst_36 = arith.constant 1.000000e+00 : f32
    %138 = vector.broadcast %cst_36 : f32 to vector<8x128xf32>
    %139 = arith.addf %138, %137 : vector<8x128xf32>
    %140 = arith.divf %138, %139 : vector<8x128xf32>
    %141 = vector.extract_strided_slice %128 {offsets = [0, 256], sizes = [8, 128], strides = [1, 1]} : vector<8x512xf32> to vector<8x128xf32>
    %142 = math.tanh %141 : vector<8x128xf32>
    %143 = vector.extract_strided_slice %128 {offsets = [0, 384], sizes = [8, 128], strides = [1, 1]} : vector<8x512xf32> to vector<8x128xf32>
    %144 = arith.negf %143 : vector<8x128xf32>
    %145 = math.exp %144 : vector<8x128xf32>
    %cst_37 = arith.constant 1.000000e+00 : f32
    %146 = vector.broadcast %cst_37 : f32 to vector<8x128xf32>
    %147 = arith.addf %146, %145 : vector<8x128xf32>
    %148 = arith.divf %146, %147 : vector<8x128xf32>
    %149 = arith.mulf %140, %122 : vector<8x128xf32>
    %150 = arith.mulf %134, %142 : vector<8x128xf32>
    %151 = arith.addf %149, %150 : vector<8x128xf32>
    %152 = math.tanh %151 : vector<8x128xf32>
    %153 = arith.mulf %148, %152 : vector<8x128xf32>
    %154 = vector.extract_strided_slice %6 {offsets = [40, 0], sizes = [8, 512], strides = [1, 1]} : vector<64x512xf32> to vector<8x512xf32>
    %c0_38 = arith.constant 0 : index
    %c0_39 = arith.constant 0 : index
    %155 = vector.load %arg2[%c0_38, %c0_39] : memref<128x512xf32, #tpu.memory_space<vmem>>, vector<128x512xf32>
    %cst_40 = arith.constant dense<0.000000e+00> : vector<8x512xf32>
    %156 = tpu.matmul %153, %155, %cst_40 {dimension_numbers = #tpu.dot_dimension_numbers<[1], [0], [0], [1], [0, 0, 1, 1], [], []>} : vector<8x128xf32>, vector<128x512xf32>, vector<8x512xf32> -> vector<8x512xf32>
    %157 = arith.addf %154, %156 : vector<8x512xf32>
    %158 = vector.extract_strided_slice %157 {offsets = [0, 0], sizes = [8, 128], strides = [1, 1]} : vector<8x512xf32> to vector<8x128xf32>
    %159 = arith.negf %158 : vector<8x128xf32>
    %160 = math.exp %159 : vector<8x128xf32>
    %cst_41 = arith.constant 1.000000e+00 : f32
    %161 = vector.broadcast %cst_41 : f32 to vector<8x128xf32>
    %162 = arith.addf %161, %160 : vector<8x128xf32>
    %163 = arith.divf %161, %162 : vector<8x128xf32>
    %164 = vector.extract_strided_slice %157 {offsets = [0, 128], sizes = [8, 128], strides = [1, 1]} : vector<8x512xf32> to vector<8x128xf32>
    %165 = arith.negf %164 : vector<8x128xf32>
    %166 = math.exp %165 : vector<8x128xf32>
    %cst_42 = arith.constant 1.000000e+00 : f32
    %167 = vector.broadcast %cst_42 : f32 to vector<8x128xf32>
    %168 = arith.addf %167, %166 : vector<8x128xf32>
    %169 = arith.divf %167, %168 : vector<8x128xf32>
    %170 = vector.extract_strided_slice %157 {offsets = [0, 256], sizes = [8, 128], strides = [1, 1]} : vector<8x512xf32> to vector<8x128xf32>
    %171 = math.tanh %170 : vector<8x128xf32>
    %172 = vector.extract_strided_slice %157 {offsets = [0, 384], sizes = [8, 128], strides = [1, 1]} : vector<8x512xf32> to vector<8x128xf32>
    %173 = arith.negf %172 : vector<8x128xf32>
    %174 = math.exp %173 : vector<8x128xf32>
    %cst_43 = arith.constant 1.000000e+00 : f32
    %175 = vector.broadcast %cst_43 : f32 to vector<8x128xf32>
    %176 = arith.addf %175, %174 : vector<8x128xf32>
    %177 = arith.divf %175, %176 : vector<8x128xf32>
    %178 = arith.mulf %169, %151 : vector<8x128xf32>
    %179 = arith.mulf %163, %171 : vector<8x128xf32>
    %180 = arith.addf %178, %179 : vector<8x128xf32>
    %181 = math.tanh %180 : vector<8x128xf32>
    %182 = arith.mulf %177, %181 : vector<8x128xf32>
    %183 = vector.extract_strided_slice %6 {offsets = [48, 0], sizes = [8, 512], strides = [1, 1]} : vector<64x512xf32> to vector<8x512xf32>
    %c0_44 = arith.constant 0 : index
    %c0_45 = arith.constant 0 : index
    %184 = vector.load %arg2[%c0_44, %c0_45] : memref<128x512xf32, #tpu.memory_space<vmem>>, vector<128x512xf32>
    %cst_46 = arith.constant dense<0.000000e+00> : vector<8x512xf32>
    %185 = tpu.matmul %182, %184, %cst_46 {dimension_numbers = #tpu.dot_dimension_numbers<[1], [0], [0], [1], [0, 0, 1, 1], [], []>} : vector<8x128xf32>, vector<128x512xf32>, vector<8x512xf32> -> vector<8x512xf32>
    %186 = arith.addf %183, %185 : vector<8x512xf32>
    %187 = vector.extract_strided_slice %186 {offsets = [0, 0], sizes = [8, 128], strides = [1, 1]} : vector<8x512xf32> to vector<8x128xf32>
    %188 = arith.negf %187 : vector<8x128xf32>
    %189 = math.exp %188 : vector<8x128xf32>
    %cst_47 = arith.constant 1.000000e+00 : f32
    %190 = vector.broadcast %cst_47 : f32 to vector<8x128xf32>
    %191 = arith.addf %190, %189 : vector<8x128xf32>
    %192 = arith.divf %190, %191 : vector<8x128xf32>
    %193 = vector.extract_strided_slice %186 {offsets = [0, 128], sizes = [8, 128], strides = [1, 1]} : vector<8x512xf32> to vector<8x128xf32>
    %194 = arith.negf %193 : vector<8x128xf32>
    %195 = math.exp %194 : vector<8x128xf32>
    %cst_48 = arith.constant 1.000000e+00 : f32
    %196 = vector.broadcast %cst_48 : f32 to vector<8x128xf32>
    %197 = arith.addf %196, %195 : vector<8x128xf32>
    %198 = arith.divf %196, %197 : vector<8x128xf32>
    %199 = vector.extract_strided_slice %186 {offsets = [0, 256], sizes = [8, 128], strides = [1, 1]} : vector<8x512xf32> to vector<8x128xf32>
    %200 = math.tanh %199 : vector<8x128xf32>
    %201 = vector.extract_strided_slice %186 {offsets = [0, 384], sizes = [8, 128], strides = [1, 1]} : vector<8x512xf32> to vector<8x128xf32>
    %202 = arith.negf %201 : vector<8x128xf32>
    %203 = math.exp %202 : vector<8x128xf32>
    %cst_49 = arith.constant 1.000000e+00 : f32
    %204 = vector.broadcast %cst_49 : f32 to vector<8x128xf32>
    %205 = arith.addf %204, %203 : vector<8x128xf32>
    %206 = arith.divf %204, %205 : vector<8x128xf32>
    %207 = arith.mulf %198, %180 : vector<8x128xf32>
    %208 = arith.mulf %192, %200 : vector<8x128xf32>
    %209 = arith.addf %207, %208 : vector<8x128xf32>
    %210 = math.tanh %209 : vector<8x128xf32>
    %211 = arith.mulf %206, %210 : vector<8x128xf32>
    %212 = vector.extract_strided_slice %6 {offsets = [56, 0], sizes = [8, 512], strides = [1, 1]} : vector<64x512xf32> to vector<8x512xf32>
    %c0_50 = arith.constant 0 : index
    %c0_51 = arith.constant 0 : index
    %213 = vector.load %arg2[%c0_50, %c0_51] : memref<128x512xf32, #tpu.memory_space<vmem>>, vector<128x512xf32>
    %cst_52 = arith.constant dense<0.000000e+00> : vector<8x512xf32>
    %214 = tpu.matmul %211, %213, %cst_52 {dimension_numbers = #tpu.dot_dimension_numbers<[1], [0], [0], [1], [0, 0, 1, 1], [], []>} : vector<8x128xf32>, vector<128x512xf32>, vector<8x512xf32> -> vector<8x512xf32>
    %215 = arith.addf %212, %214 : vector<8x512xf32>
    %216 = vector.extract_strided_slice %215 {offsets = [0, 0], sizes = [8, 128], strides = [1, 1]} : vector<8x512xf32> to vector<8x128xf32>
    %217 = arith.negf %216 : vector<8x128xf32>
    %218 = math.exp %217 : vector<8x128xf32>
    %cst_53 = arith.constant 1.000000e+00 : f32
    %219 = vector.broadcast %cst_53 : f32 to vector<8x128xf32>
    %220 = arith.addf %219, %218 : vector<8x128xf32>
    %221 = arith.divf %219, %220 : vector<8x128xf32>
    %222 = vector.extract_strided_slice %215 {offsets = [0, 128], sizes = [8, 128], strides = [1, 1]} : vector<8x512xf32> to vector<8x128xf32>
    %223 = arith.negf %222 : vector<8x128xf32>
    %224 = math.exp %223 : vector<8x128xf32>
    %cst_54 = arith.constant 1.000000e+00 : f32
    %225 = vector.broadcast %cst_54 : f32 to vector<8x128xf32>
    %226 = arith.addf %225, %224 : vector<8x128xf32>
    %227 = arith.divf %225, %226 : vector<8x128xf32>
    %228 = vector.extract_strided_slice %215 {offsets = [0, 256], sizes = [8, 128], strides = [1, 1]} : vector<8x512xf32> to vector<8x128xf32>
    %229 = math.tanh %228 : vector<8x128xf32>
    %230 = vector.extract_strided_slice %215 {offsets = [0, 384], sizes = [8, 128], strides = [1, 1]} : vector<8x512xf32> to vector<8x128xf32>
    %231 = arith.negf %230 : vector<8x128xf32>
    %232 = math.exp %231 : vector<8x128xf32>
    %cst_55 = arith.constant 1.000000e+00 : f32
    %233 = vector.broadcast %cst_55 : f32 to vector<8x128xf32>
    %234 = arith.addf %233, %232 : vector<8x128xf32>
    %235 = arith.divf %233, %234 : vector<8x128xf32>
    %236 = arith.mulf %227, %209 : vector<8x128xf32>
    %237 = arith.mulf %221, %229 : vector<8x128xf32>
    %238 = arith.addf %236, %237 : vector<8x128xf32>
    %239 = math.tanh %238 : vector<8x128xf32>
    %240 = arith.mulf %235, %239 : vector<8x128xf32>
    %c0_56 = arith.constant 0 : index
    %c0_57 = arith.constant 0 : index
    %241 = vector.load %arg4[%c0_56, %c0_57] : memref<128x256xf32, #tpu.memory_space<vmem>>, vector<128x256xf32>
    %cst_58 = arith.constant dense<0.000000e+00> : vector<8x256xf32>
    %242 = tpu.matmul %240, %241, %cst_58 {dimension_numbers = #tpu.dot_dimension_numbers<[1], [0], [0], [1], [0, 0, 1, 1], [], []>} : vector<8x128xf32>, vector<128x256xf32>, vector<8x256xf32> -> vector<8x256xf32>
    %c0_59 = arith.constant 0 : index
    %c0_60 = arith.constant 0 : index
    %243 = vector.load %arg5[%c0_59, %c0_60] : memref<1x256xf32, #tpu.memory_space<vmem>>, vector<1x256xf32>
    %244 = vector.broadcast %243 : vector<1x256xf32> to vector<8x256xf32>
    %245 = arith.addf %242, %244 : vector<8x256xf32>
    %cst_61 = arith.constant 0.000000e+00 : f32
    %246 = vector.broadcast %cst_61 : f32 to vector<8x256xf32>
    %247 = arith.maximumf %245, %246 : vector<8x256xf32>
    %c0_62 = arith.constant 0 : index
    %c0_63 = arith.constant 0 : index
    %248 = vector.load %arg6[%c0_62, %c0_63] : memref<256x128xf32, #tpu.memory_space<vmem>>, vector<256x128xf32>
    %cst_64 = arith.constant dense<0.000000e+00> : vector<8x128xf32>
    %249 = tpu.matmul %247, %248, %cst_64 {dimension_numbers = #tpu.dot_dimension_numbers<[1], [0], [0], [1], [0, 0, 1, 1], [], []>} : vector<8x256xf32>, vector<256x128xf32>, vector<8x128xf32> -> vector<8x128xf32>
    %c0_65 = arith.constant 0 : index
    %c0_66 = arith.constant 0 : index
    %250 = vector.load %arg7[%c0_65, %c0_66] : memref<1x128xf32, #tpu.memory_space<vmem>>, vector<1x128xf32>
    %251 = vector.broadcast %250 : vector<1x128xf32> to vector<8x128xf32>
    %252 = arith.addf %249, %251 : vector<8x128xf32>
    %253 = arith.negf %252 : vector<8x128xf32>
    %254 = math.exp %253 : vector<8x128xf32>
    %cst_67 = arith.constant 1.000000e+00 : f32
    %255 = vector.broadcast %cst_67 : f32 to vector<8x128xf32>
    %256 = arith.addf %255, %254 : vector<8x128xf32>
    %257 = arith.divf %255, %256 : vector<8x128xf32>
    %c0_68 = arith.constant 0 : index
    %c0_69 = arith.constant 0 : index
    %258 = vector.load %arg8[%c0_68, %c0_69] : memref<8x128xf32, #tpu.memory_space<vmem>>, vector<8x128xf32>
    tpu.vector_store %arg8[%c0_68, %c0_69], %257 {strides = array<i32>} : memref<8x128xf32, #tpu.memory_space<vmem>>, vector<8x128xf32>,
    return
  }
}

</mosaic_0001>

<bundles_post_ra>
// kernel: net2_forward.1
= control target key start
LH: loop header
LB: loop body
LE: loop exit
PB: predicated region body
PF: predicated region fallthrough
CT: control target
= control target key end

     0   :  { %13 = vsyncpa [#allocation3], 0  ;;  %s3786_s0 = inlined_call_operand.vmem [shape: f32[8,8,128], index: 0, kind: input, shape index: {}]   ;;  %s3787_s1 = inlined_call_operand.vmem [shape: f32[128,512], index: 1, kind: input, shape index: {}]   ;;  %s3788_s2 = inlined_call_operand.hbm [shape: f32[128,512], index: 2, kind: input, shape index: {}]   ;;  %s3789_s3 = inlined_call_operand.vmem [shape: f32[1,512], index: 3, kind: input, shape index: {}]   ;;  %s3790_s4 = inlined_call_operand.hbm [shape: f32[128,256], index: 4, kind: input, shape index: {}]   ;;  %s3791_s5 = inlined_call_operand.vmem [shape: f32[1,256], index: 5, kind: input, shape index: {}]   ;;  %s3792_s6 = inlined_call_operand.hbm [shape: f32[256,128], index: 6, kind: input, shape index: {}]   ;;  %s3793_s7 = inlined_call_operand.vmem [shape: f32[1,128], index: 7, kind: input, shape index: {}]   ;;  %s3794_s8 = inlined_call_operand.vmem [shape: f32[8,128], index: 8, kind: output, shape index: {}]  }
   0x1   :  { %14 = vsyncpa [#allocation5], 0  ;;  %s3030_s27 = smov [#allocation4]   ;;  %s2960_s9 = scalar_lea.hbm %s3790_s4, 4096 }
   0x2   :  { %s38_s28 = sshll.u32 %s3030_s27, 4  ;;  %p2961_p0 = scmp.ne.s32.totalorder %s3790_s4, %s2960_s9  ;;  %s39_s28 = int_to_ptr.vmem [resolvable:$true] %s38_s28 }
   0x3   :  { %p2964_p1 = scmp.lt.u32.totalorder %s2960_s9, %s3790_s4 }
   0x5   :  { %p2966_p2 = pnand %p2964_p1, %p2961_p0 }
   0x7   :  { %2969 = shalt.err (!%p2966_p2)
}
   0x8   :  { %s2970_s14 = scalar_lea.vmem %s39_s28, 4096  ;;  %p2975_p4 = scmp.lt.s32.totalorder %s39_s28, %s39_s28 }
   0x9   :  { %p2971_p3 = scmp.ne.s32.totalorder %s39_s28, %s2970_s14  ;;  %p2976_p5 = scmp.lt.s32.totalorder %s2970_s14, %s2970_s14 }
   0xb   :  { %p2977_p6 = por %p2976_p5, %p2975_p4 }
   0xd   :  { %p2978_p7 = pnand %p2977_p6, %p2971_p3 }
   0xf   :  { %2981 = shalt.err (!%p2978_p7)
}
  0x10   :  { %s3031_s15 = smov 256   ;;  %s3032_s16 = smov 16  }
  0x11   :  { %44 = dma.hbm_to_vmem [thread:$0]  %s3790_s4, 4096, %s39_s28, [#allocation5], %s3031_s15, %s3031_s15, %s3032_s16  }
  0x12   :  { %s3033_s19 = smov [#allocation2]   ;;  %s2982_s23 = scalar_lea.hbm %s3788_s2, 8192 }
  0x13   :  { %s24_s20 = sshll.u32 %s3033_s19, 4  ;;  %p2983_p8 = scmp.ne.s32.totalorder %s3788_s2, %s2982_s23  ;;  %s25_s20 = int_to_ptr.vmem [resolvable:$true] %s24_s20 }
  0x14   :  { %p2986_p9 = scmp.lt.u32.totalorder %s2982_s23, %s3788_s2 }
  0x16   :  { %p2988_p10 = pnand %p2986_p9, %p2983_p8 }
  0x18   :  { %2991 = shalt.err (!%p2988_p10)
}
  0x19   :  { %s2992_s29 = scalar_lea.vmem %s25_s20, 8192  ;;  %p2997_p12 = scmp.lt.s32.totalorder %s25_s20, %s25_s20 }
  0x1a   :  { %p2993_p11 = scmp.ne.s32.totalorder %s25_s20, %s2992_s29  ;;  %p2998_p13 = scmp.lt.s32.totalorder %s2992_s29, %s2992_s29 }
  0x1c   :  { %p2999_p0 = por %p2998_p13, %p2997_p12 }
  0x1e   :  { %p3000_p1 = pnand %p2999_p0, %p2993_p11 }
  0x20   :  { %3003 = shalt.err (!%p3000_p1)
}
  0x21   :  { %s3034_s4 = smov 512   ;;  %s3035_s28 = smov 32  }
  0x22   :  { %30 = dma.hbm_to_vmem [thread:$0]  %s3788_s2, 8192, %s25_s20, [#allocation3], %s3034_s4, %s3034_s4, %s3035_s28  }
  0x23   :  { %s3036_s10 = smov [#allocation6]   ;;  %s3004_s14 = scalar_lea.hbm %s3792_s6, 4096 }
  0x24   :  { %s52_s11 = sshll.u32 %s3036_s10, 4  ;;  %p3005_p2 = scmp.ne.s32.totalorder %s3792_s6, %s3004_s14  ;;  %s53_s11 = int_to_ptr.vmem [resolvable:$true] %s52_s11 }
  0x25   :  { %p3008_p3 = scmp.lt.u32.totalorder %s3004_s14, %s3792_s6 }
  0x27   :  { %p3010_p4 = pnand %p3008_p3, %p3005_p2 }
  0x29   :  { %3013 = shalt.err (!%p3010_p4)
}
  0x2a   :  { %s3014_s19 = scalar_lea.vmem %s53_s11, 4096  ;;  %p3019_p6 = scmp.lt.s32.totalorder %s53_s11, %s53_s11 }
  0x2b   :  { %p3015_p5 = scmp.ne.s32.totalorder %s53_s11, %s3014_s19  ;;  %p3020_p7 = scmp.lt.s32.totalorder %s3014_s19, %s3014_s19 }
  0x2d   :  { %p3021_p8 = por %p3020_p7, %p3019_p6 }
  0x2f   :  { %p3022_p9 = pnand %p3021_p8, %p3015_p5 }
  0x31   :  { %3025 = shalt.err (!%p3022_p9)
}
  0x32   :  { %s3037_s2 = smov 128   ;;  %s3038_s20 = smov 8  }
  0x33   :  { %58 = dma.hbm_to_vmem [thread:$0]  %s3792_s6, 4096, %s53_s11, [#allocation5], %s3037_s2, %s3037_s2, %s3038_s20  }
  0x34   :  { %3026 = dma.done.wait [#allocation3], 8192  }
  0x35   :  { %3027 = vsyncadd [#allocation3], 4294959104 }
  0x36   :  { %3028 = dma.done.wait [#allocation5], 8192  }
  0x37   :  { %3029 = vsyncadd [#allocation5], 4294959104  ;;  %v3039_v0 = vmov 0.0   ;;  %v79_v1 = vld [vmem:[%s3787_s1 + $0x8] sm:$0xff]  ;;  %v81_v3 = vld [vmem:[%s3787_s1 + $0x18] sm:$0xff] }
  0x38   :  { %228 = vmatprep.mubr.f32.mxu0 %v3039_v0  ;;  %341 = vmatprep.mubr.f32.mxu1 %v3039_v0  ;;  %v83_v2 = vld [vmem:[%s3787_s1 + $0x28] sm:$0xff]  ;;  %v85_v5 = vld [vmem:[%s3787_s1 + $0x38] sm:$0xff]  ;;  %v78_v6 = vld [vmem:[%s3787_s1] sm:$0xff] }
  0x39   :  { %v2114_v4 = vpack.c.bf16 %v83_v2, %v79_v1  ;;  %v82_v7 = vld [vmem:[%s3787_s1 + $0x20] sm:$0xff]  ;;  %v2146_v8 = vpack.c.bf16 %v85_v5, %v81_v3  ;;  %v80_v10 = vld [vmem:[%s3787_s1 + $0x10] sm:$0xff]  ;;  %v87_v12 = vld [vmem:[%s3787_s1 + $0x48] sm:$0xff] }
  0x3a   :  { %v2116_v9 = vpack.c.bf16 %v82_v7, %v78_v6  ;;  %v84_v11 = vld [vmem:[%s3787_s1 + $0x30] sm:$0xff]  ;;  %v91_v14 = vld [vmem:[%s3787_s1 + $0x68] sm:$0xff]  ;;  %v89_v15 = vld [vmem:[%s3787_s1 + $0x58] sm:$0xff] }
  0x3b   :  { %2115 = vmatprep.subr.bf16.mxu0 %v2114_v4  ;;  %v2148_v13 = vpack.c.bf16 %v84_v11, %v80_v10  ;;  %v93_v16 = vld [vmem:[%s3787_s1 + $0x78] sm:$0xff]  ;;  %2147 = vmatprep.subr.bf16.mxu1 %v2146_v8  ;;  %v2118_v17 = vpack.c.bf16 %v91_v14, %v87_v12  ;;  %v86_v19 = vld [vmem:[%s3787_s1 + $0x40] sm:$0xff]  ;;  %v88_v21 = vld [vmem:[%s3787_s1 + $0x50] sm:$0xff] }
  0x3c   :  { %2117 = vmatpush1.bf16.msra.mxu0 %v2116_v9  ;;  %v2150_v18 = vpack.c.bf16 %v93_v16, %v89_v15  ;;  %v90_v20 = vld [vmem:[%s3787_s1 + $0x60] sm:$0xff]  ;;  %v92_v23 = vld [vmem:[%s3787_s1 + $0x70] sm:$0xff]  ;;  %v95_v24 = vld [vmem:[%s3787_s1 + $0x88] sm:$0xff] }
  0x3d   :  { %2149 = vmatpush1.bf16.msra.mxu1 %v2148_v13  ;;  %v2120_v22 = vpack.c.bf16 %v90_v20, %v86_v19  ;;  %v99_v25 = vld [vmem:[%s3787_s1 + $0xa8] sm:$0xff]  ;;  %2119 = vmatprep.subr.bf16.mxu0 %v2118_v17  ;;  %v2152_v26 = vpack.c.bf16 %v92_v23, %v88_v21  ;;  %v97_v28 = vld [vmem:[%s3787_s1 + $0x98] sm:$0xff]  ;;  %v94_v30 = vld [vmem:[%s3787_s1 + $0x80] sm:$0xff] }
  0x3e   :  { %2151 = vmatprep.subr.bf16.mxu1 %v2150_v18  ;;  %v2122_v27 = vpack.c.bf16 %v99_v25, %v95_v24  ;;  %v101_v29 = vld [vmem:[%s3787_s1 + $0xb8] sm:$0xff]  ;;  %v98_v32 = vld [vmem:[%s3787_s1 + $0xa0] sm:$0xff]  ;;  %v96_v33 = vld [vmem:[%s3787_s1 + $0x90] sm:$0xff] }
  0x3f   :  { %v2154_v31 = vpack.c.bf16 %v101_v29, %v97_v28  ;;  %v100_v34 = vld [vmem:[%s3787_s1 + $0xb0] sm:$0xff]  ;;  %v2124_v35 = vpack.c.bf16 %v98_v32, %v94_v30  ;;  %v103_v36 = vld [vmem:[%s3787_s1 + $0xc8] sm:$0xff]  ;;  %v105_v38 = vld [vmem:[%s3787_s1 + $0xd8] sm:$0xff] }
  0x40   :  { %2121 = vmatpush1.bf16.msra.mxu0 %v2120_v22  ;;  %v107_v37 = vld [vmem:[%s3787_s1 + $0xe8] sm:$0xff]  ;;  %v2156_v39 = vpack.c.bf16 %v100_v34, %v96_v33  ;;  %v109_v41 = vld [vmem:[%s3787_s1 + $0xf8] sm:$0xff]  ;;  %v102_v42 = vld [vmem:[%s3787_s1 + $0xc0] sm:$0xff] }
  0x41   :  { %2153 = vmatpush1.bf16.msra.mxu1 %v2152_v26  ;;  %2123 = vmatprep.subr.bf16.mxu0 %v2122_v27  ;;  %v2126_v40 = vpack.c.bf16 %v107_v37, %v103_v36  ;;  %v106_v43 = vld [vmem:[%s3787_s1 + $0xe0] sm:$0xff]  ;;  %v2158_v44 = vpack.c.bf16 %v109_v41, %v105_v38  ;;  %v104_v45 = vld [vmem:[%s3787_s1 + $0xd0] sm:$0xff]  ;;  %v111_v47 = vld [vmem:[%s3787_s1 + $0x108] sm:$0xff] }
  0x42   :  { %2155 = vmatprep.subr.bf16.mxu1 %v2154_v31  ;;  %v108_v46 = vld [vmem:[%s3787_s1 + $0xf0] sm:$0xff]  ;;  %v115_v48 = vld [vmem:[%s3787_s1 + $0x128] sm:$0xff]  ;;  %v113_v49 = vld [vmem:[%s3787_s1 + $0x118] sm:$0xff]  ;;  %v2128_v51 = vpack.c.bf16 %v106_v43, %v102_v42 }
  0x43   :  { %v117_v50 = vld [vmem:[%s3787_s1 + $0x138] sm:$0xff]  ;;  %v2160_v52 = vpack.c.bf16 %v108_v46, %v104_v45  ;;  %v2130_v53 = vpack.c.bf16 %v115_v48, %v111_v47  ;;  %v110_v54 = vld [vmem:[%s3787_s1 + $0x100] sm:$0xff]  ;;  %v112_v56 = vld [vmem:[%s3787_s1 + $0x110] sm:$0xff] }
  0x44   :  { %2125 = vmatpush1.bf16.msra.mxu0 %v2124_v35  ;;  %v114_v55 = vld [vmem:[%s3787_s1 + $0x120] sm:$0xff]  ;;  %v2162_v57 = vpack.c.bf16 %v117_v50, %v113_v49  ;;  %v116_v58 = vld [vmem:[%s3787_s1 + $0x130] sm:$0xff]  ;;  %v119_v59 = vld [vmem:[%s3787_s1 + $0x148] sm:$0xff] }
  0x45   :  { %2157 = vmatpush1.bf16.msra.mxu1 %v2156_v39  ;;  %2127 = vmatprep.subr.bf16.mxu0 %v2126_v40  ;;  %v123_v60 = vld [vmem:[%s3787_s1 + $0x168] sm:$0xff]  ;;  %v121_v61 = vld [vmem:[%s3787_s1 + $0x158] sm:$0xff]  ;;  %v2132_v63 = vpack.c.bf16 %v114_v55, %v110_v54  ;;  %v2164_v1 = vpack.c.bf16 %v116_v58, %v112_v56  ;;  %v118_v3 = vld [vmem:[%s3787_s1 + $0x140] sm:$0xff] }
  0x46   :  { %2159 = vmatprep.subr.bf16.mxu1 %v2158_v44  ;;  %v125_v62 = vld [vmem:[%s3787_s1 + $0x178] sm:$0xff]  ;;  %v2134_v2 = vpack.c.bf16 %v123_v60, %v119_v59  ;;  %v122_v4 = vld [vmem:[%s3787_s1 + $0x160] sm:$0xff]  ;;  %v120_v5 = vld [vmem:[%s3787_s1 + $0x150] sm:$0xff] }
  0x47   :  { %v2166_v6 = vpack.c.bf16 %v125_v62, %v121_v61  ;;  %v124_v7 = vld [vmem:[%s3787_s1 + $0x170] sm:$0xff]  ;;  %v127_v8 = vld [vmem:[%s3787_s1 + $0x188] sm:$0xff]  ;;  %v129_v10 = vld [vmem:[%s3787_s1 + $0x198] sm:$0xff]  ;;  %v2136_v12 = vpack.c.bf16 %v122_v4, %v118_v3 }
  0x48   :  { %2129 = vmatpush1.bf16.msra.mxu0 %v2128_v51  ;;  %v131_v9 = vld [vmem:[%s3787_s1 + $0x1a8] sm:$0xff]  ;;  %v133_v11 = vld [vmem:[%s3787_s1 + $0x1b8] sm:$0xff]  ;;  %v2168_v13 = vpack.c.bf16 %v124_v7, %v120_v5  ;;  %v126_v15 = vld [vmem:[%s3787_s1 + $0x180] sm:$0xff] }
  0x49   :  { %2161 = vmatpush1.bf16.msra.mxu1 %v2160_v52  ;;  %2131 = vmatprep.subr.bf16.mxu0 %v2130_v53  ;;  %v2138_v14 = vpack.c.bf16 %v131_v9, %v127_v8  ;;  %v130_v16 = vld [vmem:[%s3787_s1 + $0x1a0] sm:$0xff]  ;;  %v128_v17 = vld [vmem:[%s3787_s1 + $0x190] sm:$0xff]  ;;  %v2170_v18 = vpack.c.bf16 %v133_v11, %v129_v10  ;;  %v135_v20 = vld [vmem:[%s3787_s1 + $0x1c8] sm:$0xff] }
  0x4a   :  { %2163 = vmatprep.subr.bf16.mxu1 %v2162_v57  ;;  %v132_v19 = vld [vmem:[%s3787_s1 + $0x1b0] sm:$0xff]  ;;  %v139_v21 = vld [vmem:[%s3787_s1 + $0x1e8] sm:$0xff]  ;;  %v137_v22 = vld [vmem:[%s3787_s1 + $0x1d8] sm:$0xff]  ;;  %v2140_v24 = vpack.c.bf16 %v130_v16, %v126_v15 }
  0x4b   :  { %v141_v23 = vld [vmem:[%s3787_s1 + $0x1f8] sm:$0xff]  ;;  %v2172_v25 = vpack.c.bf16 %v132_v19, %v128_v17  ;;  %v2142_v26 = vpack.c.bf16 %v139_v21, %v135_v20  ;;  %v134_v27 = vld [vmem:[%s3787_s1 + $0x1c0] sm:$0xff]  ;;  %v136_v29 = vld [vmem:[%s3787_s1 + $0x1d0] sm:$0xff] }
  0x4c   :  { %2133 = vmatpush1.bf16.msra.mxu0 %v2132_v63  ;;  %v138_v28 = vld [vmem:[%s3787_s1 + $0x1e0] sm:$0xff]  ;;  %v2174_v30 = vpack.c.bf16 %v141_v23, %v137_v22  ;;  %v140_v31 = vld [vmem:[%s3787_s1 + $0x1f0] sm:$0xff]  ;;  %v391_v32 = vld [vmem:[#allocation2 + $0x8] sm:$0xff] }
  0x4d   :  { %2165 = vmatpush1.bf16.msra.mxu1 %v2164_v1  ;;  %2135 = vmatprep.subr.bf16.mxu0 %v2134_v2  ;;  %v395_v33 = vld [vmem:[#allocation2 + $0x28] sm:$0xff]  ;;  %v393_v34 = vld [vmem:[#allocation2 + $0x18] sm:$0xff]  ;;  %v2144_v36 = vpack.c.bf16 %v138_v28, %v134_v27  ;;  %v2176_v37 = vpack.c.bf16 %v140_v31, %v136_v29  ;;  %v390_v39 = vld [vmem:[#allocation2] sm:$0xff] }
  0x4e   :  { %2167 = vmatprep.subr.bf16.mxu1 %v2166_v6  ;;  %v397_v35 = vld [vmem:[#allocation2 + $0x38] sm:$0xff]  ;;  %v3315_v38 = vpack.c.bf16 %v395_v33, %v391_v32  ;;  %v394_v40 = vld [vmem:[#allocation2 + $0x20] sm:$0xff]  ;;  %v392_v42 = vld [vmem:[#allocation2 + $0x10] sm:$0xff] }
  0x4f   :  { %v3317_v41 = vpack.c.bf16 %v397_v35, %v393_v34  ;;  %v396_v43 = vld [vmem:[#allocation2 + $0x30] sm:$0xff]  ;;  %v399_v44 = vld [vmem:[#allocation2 + $0x48] sm:$0xff]  ;;  %v70_v46 = vld [vmem:[%s3786_s0] sm:$0xff]  ;;  %v3322_v47 = vpack.c.bf16 %v394_v40, %v390_v39 }
  0x50   :  { %2137 = vmatpush1.bf16.msra.mxu0 %v2136_v12  ;;  %v403_v45 = vld [vmem:[#allocation2 + $0x68] sm:$0xff]  ;;  %v401_v48 = vld [vmem:[#allocation2 + $0x58] sm:$0xff]  ;;  %v3325_v50 = vpack.c.bf16 %v396_v43, %v392_v42  ;;  %v398_v51 = vld [vmem:[#allocation2 + $0x40] sm:$0xff] }
  0x51   :  { %2169 = vmatpush1.bf16.msra.mxu1 %v2168_v13  ;;  %2139 = vmatprep.subr.bf16.mxu0 %v2138_v14  ;;  %v405_v49 = vld [vmem:[#allocation2 + $0x78] sm:$0xff]  ;;  %v402_v52 = vld [vmem:[#allocation2 + $0x60] sm:$0xff]  ;;  %v3328_v53 = vpack.c.bf16 %v403_v45, %v399_v44  ;;  %v400_v54 = vld [vmem:[#allocation2 + $0x50] sm:$0xff] }
  0x52   :  { %2171 = vmatprep.subr.bf16.mxu1 %v2170_v18  ;;  %v404_v55 = vld [vmem:[#allocation2 + $0x70] sm:$0xff]  ;;  %v3330_v56 = vpack.c.bf16 %v405_v49, %v401_v48  ;;  %v407_v57 = vld [vmem:[#allocation2 + $0x88] sm:$0xff]  ;;  %v3336_v60 = vpack.c.bf16 %v402_v52, %v398_v51  ;;  %v409_v61 = vld [vmem:[#allocation2 + $0x98] sm:$0xff] }
  0x53   :  { %v411_v58 = vld [vmem:[#allocation2 + $0xa8] sm:$0xff]  ;;  %v413_v62 = vld [vmem:[#allocation2 + $0xb8] sm:$0xff]  ;;  %v3340_v63 = vpack.c.bf16 %v404_v55, %v400_v54  ;;  %v406_v1 = vld [vmem:[#allocation2 + $0x80] sm:$0xff] }
  0x54   :  { %2141 = vmatpush1.bf16.msra.mxu0 %v2140_v24  ;;  %v71_v59 = vld [vmem:[%s3786_s0 + $0x8] sm:$0xff]  ;;  %v410_v2 = vld [vmem:[#allocation2 + $0xa0] sm:$0xff]  ;;  %v3344_v3 = vpack.c.bf16 %v411_v58, %v407_v57  ;;  %v408_v4 = vld [vmem:[#allocation2 + $0x90] sm:$0xff]  ;;  %v3347_v6 = vpack.c.bf16 %v413_v62, %v409_v61 }
  0x55   :  { %2173 = vmatpush1.bf16.msra.mxu1 %v2172_v25  ;;  %2143 = vmatprep.subr.bf16.mxu0 %v2142_v26  ;;  %v412_v5 = vld [vmem:[#allocation2 + $0xb0] sm:$0xff]  ;;  %v415_v7 = vld [vmem:[#allocation2 + $0xc8] sm:$0xff]  ;;  %v3353_v10 = vpack.c.bf16 %v410_v2, %v406_v1  ;;  %v417_v11 = vld [vmem:[#allocation2 + $0xd8] sm:$0xff] }
  0x56   :  { %2175 = vmatprep.subr.bf16.mxu1 %v2174_v30  ;;  %v419_v8 = vld [vmem:[#allocation2 + $0xe8] sm:$0xff]  ;;  %v72_v9 = vld [vmem:[%s3786_s0 + $0x10] sm:$0xff]  ;;  %v421_v12 = vld [vmem:[#allocation2 + $0xf8] sm:$0xff]  ;;  %v3357_v13 = vpack.c.bf16 %v412_v5, %v408_v4 }
  0x57   :  { %v414_v14 = vld [vmem:[#allocation2 + $0xc0] sm:$0xff]  ;;  %v3361_v16 = vpack.c.bf16 %v419_v8, %v415_v7  ;;  %v416_v17 = vld [vmem:[#allocation2 + $0xd0] sm:$0xff]  ;;  %v3364_v19 = vpack.c.bf16 %v421_v12, %v417_v11  ;;  %v423_v20 = vld [vmem:[#allocation2 + $0x108] sm:$0xff] }
  0x58   :  { %2145 = vmatpush1.bf16.msra.mxu0 %v2144_v36  ;;  %v418_v15 = vld [vmem:[#allocation2 + $0xe0] sm:$0xff]  ;;  %v420_v18 = vld [vmem:[#allocation2 + $0xf0] sm:$0xff]  ;;  %v427_v21 = vld [vmem:[#allocation2 + $0x128] sm:$0xff] }
  0x59   :  { %2177 = vmatpush1.bf16.msra.mxu1 %v2176_v37  ;;  %2179 = vmatprep.subr.bf16.mxu0 %v3315_v38  ;;  %v73_v22 = vld [vmem:[%s3786_s0 + $0x18] sm:$0xff]  ;;  %v3370_v23 = vpack.c.bf16 %v418_v15, %v414_v14  ;;  %v3374_v26 = vpack.c.bf16 %v420_v18, %v416_v17  ;;  %v422_v27 = vld [vmem:[#allocation2 + $0x100] sm:$0xff]  ;;  %v3378_v29 = vpack.c.bf16 %v427_v21, %v423_v20  ;;  %v424_v30 = vld [vmem:[#allocation2 + $0x110] sm:$0xff] }
  0x5a   :  { %2211 = vmatprep.subr.bf16.mxu1 %v3317_v41  ;;  %v425_v24 = vld [vmem:[#allocation2 + $0x118] sm:$0xff]  ;;  %v426_v28 = vld [vmem:[#allocation2 + $0x120] sm:$0xff]  ;;  %v428_v31 = vld [vmem:[#allocation2 + $0x130] sm:$0xff] }
  0x5b   :  { %229 = vmatmul.mubr.f32.vlgmr.msra.gmra.mrb[0].mxu0 %v70_v46  ;;  %v429_v25 = vld [vmem:[#allocation2 + $0x138] sm:$0xff]  ;;  %v431_v33 = vld [vmem:[#allocation2 + $0x148] sm:$0xff]  ;;  %v74_v35 = vld [vmem:[%s3786_s0 + $0x20] sm:$0xff]  ;;  %v3387_v36 = vpack.c.bf16 %v426_v28, %v422_v27  ;;  %v3391_v40 = vpack.c.bf16 %v428_v31, %v424_v30  ;;  %v144_v28 = vlaneseq }
  0x5c   :  { %342 = vmatmul.mubr.f32.vlgmr.msra.gmra.mrb[0].mxu1 %v70_v46  ;;  %2181 = vmatpush1.bf16.msra.mxu0 %v3322_v47  ;;  %v3381_v32 = vpack.c.bf16 %v429_v25, %v425_v24  ;;  %v435_v34 = vld [vmem:[#allocation2 + $0x168] sm:$0xff]  ;;  %v433_v37 = vld [vmem:[#allocation2 + $0x158] sm:$0xff]  ;;  %v430_v42 = vld [vmem:[#allocation2 + $0x140] sm:$0xff] }
  0x5d   :  { %2213 = vmatpush1.bf16.msra.mxu1 %v3325_v50  ;;  %234 = vmatprep.mubr.f32.mxu0 %v3039_v0  ;;  %v437_v39 = vld [vmem:[#allocation2 + $0x178] sm:$0xff]  ;;  %v434_v43 = vld [vmem:[#allocation2 + $0x160] sm:$0xff]  ;;  %v3395_v44 = vpack.c.bf16 %v435_v34, %v431_v33  ;;  %v432_v45 = vld [vmem:[#allocation2 + $0x150] sm:$0xff]  ;;  %v3489_v30 = vshrl.u32 %v144_v28, 7 }
  0x5e   :  { %347 = vmatprep.mubr.f32.mxu1 %v3039_v0  ;;  %2183 = vmatprep.subr.bf16.mxu0 %v3328_v53  ;;  %v436_v46 = vld [vmem:[#allocation2 + $0x170] sm:$0xff]  ;;  %v3398_v48 = vpack.c.bf16 %v437_v39, %v433_v37  ;;  %v439_v49 = vld [vmem:[#allocation2 + $0x188] sm:$0xff]  ;;  %v3404_v54 = vpack.c.bf16 %v434_v43, %v430_v42  ;;  %v441_v55 = vld [vmem:[#allocation2 + $0x198] sm:$0xff] }
  0x5f   :  { %235 = vmatmul.mubr.f32.gmra.mrb[2].mxu0 %v71_v59  ;;  %2215 = vmatprep.subr.bf16.mxu1 %v3330_v56  ;;  %v443_v51 = vld [vmem:[#allocation2 + $0x1a8] sm:$0xff]  ;;  %v445_v57 = vld [vmem:[#allocation2 + $0x1b8] sm:$0xff]  ;;  %v3408_v58 = vpack.c.bf16 %v436_v46, %v432_v45  ;;  %v442_v61 = vld [vmem:[#allocation2 + $0x1a0] sm:$0xff]  ;;  %v146_v31 = vsub.s32 0, %v3489_v30  ;;  %v150_v34 = vsub.s32 1, %v3489_v30  ;;  %v158_v42 = vsub.s32 3, %v3489_v30 }
  0x60   :  { %348 = vmatmul.mubr.f32.gmra.mrb[2].mxu1 %v71_v59  ;;  %2185 = vmatpush1.bf16.msra.mxu0 %v3336_v60  ;;  %v75_v52 = vld [vmem:[%s3786_s0 + $0x28] sm:$0xff]  ;;  %v438_v59 = vld [vmem:[#allocation2 + $0x180] sm:$0xff]  ;;  %v3412_v62 = vpack.c.bf16 %v443_v51, %v439_v49  ;;  %v440_v1 = vld [vmem:[#allocation2 + $0x190] sm:$0xff]  ;;  %v3415_v4 = vpack.c.bf16 %v445_v57, %v441_v55 }
  0x61   :  { %2217 = vmatpush1.bf16.msra.mxu1 %v3340_v63  ;;  %240 = vmatprep.mubr.f32.mxu0 %v3039_v0  ;;  %v444_v2 = vld [vmem:[#allocation2 + $0x1b0] sm:$0xff]  ;;  %v447_v5 = vld [vmem:[#allocation2 + $0x1c8] sm:$0xff]  ;;  %v449_v11 = vld [vmem:[#allocation2 + $0x1d8] sm:$0xff] }
  0x62   :  { %353 = vmatprep.mubr.f32.mxu1 %v3039_v0  ;;  %2187 = vmatprep.subr.bf16.mxu0 %v3344_v3  ;;  %v451_v7 = vld [vmem:[#allocation2 + $0x1e8] sm:$0xff]  ;;  %v76_v8 = vld [vmem:[%s3786_s0 + $0x30] sm:$0xff]  ;;  %v453_v12 = vld [vmem:[#allocation2 + $0x1f8] sm:$0xff]  ;;  %v3425_v14 = vpack.c.bf16 %v444_v2, %v440_v1 }
  0x63   :  { %241 = vmatmul.mubr.f32.gmra.mrb[4].mxu0 %v72_v9  ;;  %2219 = vmatprep.subr.bf16.mxu1 %v3347_v6  ;;  %v446_v15 = vld [vmem:[#allocation2 + $0x1c0] sm:$0xff]  ;;  %v3429_v18 = vpack.c.bf16 %v451_v7, %v447_v5  ;;  %v448_v20 = vld [vmem:[#allocation2 + $0x1d0] sm:$0xff]  ;;  %v77_v24 = vld [vmem:[%s3786_s0 + $0x38] sm:$0xff] }
  0x64   :  { %354 = vmatmul.mubr.f32.gmra.mrb[4].mxu1 %v72_v9  ;;  %2189 = vmatpush1.bf16.msra.mxu0 %v3353_v10  ;;  %v3421_v9 = vpack.c.bf16 %v442_v61, %v438_v59  ;;  %v450_v17 = vld [vmem:[#allocation2 + $0x1e0] sm:$0xff]  ;;  %v452_v21 = vld [vmem:[#allocation2 + $0x1f0] sm:$0xff]  ;;  %v154_v59 = vsub.s32 2, %v3489_v30 }
  0x65   :  { %2221 = vmatpush1.bf16.msra.mxu1 %v3357_v13  ;;  %246 = vmatprep.mubr.f32.mxu0 %v3039_v0  ;;  %v3438_v25 = vpack.c.bf16 %v450_v17, %v446_v15  ;;  %v3442_v27 = vpack.c.bf16 %v452_v21, %v448_v20  ;;  %v142_v33 = vld [vmem:[%s3789_s3] sm:$0xf] }
  0x66   :  { %359 = vmatprep.mubr.f32.mxu1 %v3039_v0  ;;  %2191 = vmatprep.subr.bf16.mxu0 %v3361_v16  ;;  %v3502_v37 = vrot.slane %v142_v33, %v150_v34  ;;  %v3507_v57 = vrot.slane %v142_v33, %v158_v42  ;;  %v3511_v1 = vrot.slane %v142_v33, %v154_v59 }
  0x67   :  { %247 = vmatmul.mubr.f32.gmra.mrb[6].mxu0 %v73_v22  ;;  %2223 = vmatprep.subr.bf16.mxu1 %v3364_v19 }
  0x68   :  { %360 = vmatmul.mubr.f32.gmra.mrb[6].mxu1 %v73_v22  ;;  %2193 = vmatpush1.bf16.msra.mxu0 %v3370_v23  ;;  %v3432_v22 = vpack.c.bf16 %v453_v12, %v449_v11 }
  0x69   :  { %2225 = vmatpush1.bf16.msra.mxu1 %v3374_v26  ;;  %252 = vmatprep.mubr.f32.mxu0 %v3039_v0 }
  0x6a   :  { %365 = vmatprep.mubr.f32.mxu1 %v3039_v0  ;;  %2195 = vmatprep.subr.bf16.mxu0 %v3378_v29 }
  0x6b   :  { %253 = vmatmul.mubr.f32.gmra.mrb[8].mxu0 %v74_v35  ;;  %2227 = vmatprep.subr.bf16.mxu1 %v3381_v32 }
  0x6c   :  { %366 = vmatmul.mubr.f32.gmra.mrb[8].mxu1 %v74_v35  ;;  %2197 = vmatpush1.bf16.msra.mxu0 %v3387_v36  ;;  %v3498_v35 = vrot.slane %v142_v33, %v146_v31 }
  0x6d   :  { %2229 = vmatpush1.bf16.msra.mxu1 %v3391_v40  ;;  %258 = vmatprep.mubr.f32.mxu0 %v3039_v0 }
  0x6e   :  { %371 = vmatprep.mubr.f32.mxu1 %v3039_v0  ;;  %2199 = vmatprep.subr.bf16.mxu0 %v3395_v44 }
  0x6f   :  { %259 = vmatmul.mubr.f32.gmra.mrb[10].mxu0 %v75_v52  ;;  %2231 = vmatprep.subr.bf16.mxu1 %v3398_v48 }
  0x70   :  { %372 = vmatmul.mubr.f32.gmra.mrb[10].mxu1 %v75_v52  ;;  %2201 = vmatpush1.bf16.msra.mxu0 %v3404_v54 }
  0x71   :  { %2233 = vmatpush1.bf16.msra.mxu1 %v3408_v58  ;;  %264 = vmatprep.mubr.f32.mxu0 %v3039_v0 }
  0x72   :  { %377 = vmatprep.mubr.f32.mxu1 %v3039_v0  ;;  %2203 = vmatprep.subr.bf16.mxu0 %v3412_v62 }
  0x73   :  { %265 = vmatmul.mubr.f32.gmra.mrb[12].mxu0 %v76_v8  ;;  %2235 = vmatprep.subr.bf16.mxu1 %v3415_v4 }
  0x74   :  { %378 = vmatmul.mubr.f32.gmra.mrb[12].mxu1 %v76_v8  ;;  %2205 = vmatpush1.bf16.msra.mxu0 %v3421_v9 }
  0x75   :  { %2237 = vmatpush1.bf16.msra.mxu1 %v3425_v14  ;;  %270 = vmatprep.mubr.f32.mxu0 %v3039_v0 }
  0x76   :  { %383 = vmatprep.mubr.f32.mxu1 %v3039_v0  ;;  %2207 = vmatprep.subr.bf16.mxu0 %v3429_v18 }
  0x77   :  { %271 = vmatmul.mubr.f32.gmra.mrb[14].mxu0 %v77_v24  ;;  %2239 = vmatprep.subr.bf16.mxu1 %v3432_v22 }
  0x78   :  { %384 = vmatmul.mubr.f32.gmra.mrb[14].mxu1 %v77_v24  ;;  %2209 = vmatpush1.bf16.msra.mxu0 %v3438_v25 }
  0x79   :  { %2241 = vmatpush1.bf16.msra.mxu1 %v3442_v27  ;;  %518 = vmatprep.mubr.f32.mxu0 %v3039_v0 }
  0x7a   :  { %589 = vmatprep.mubr.f32.mxu1 %v3039_v0  ;;  %2243 = vmatprep.subr.bf16.mxu0 %v3315_v38 }
  0x7b   :  { %519 = vmatmul.mubr.f32.vlgmr.msra.gmra.mrb[0].mxu0 %v3039_v0  ;;  %2275 = vmatprep.subr.bf16.mxu1 %v3317_v41 }
  0x7c   :  { %590 = vmatmul.mubr.f32.vlgmr.msra.gmra.mrb[0].mxu1 %v3039_v0  ;;  %2245 = vmatpush1.bf16.msra.mxu0 %v3322_v47 }
  0x7d   :  { %2277 = vmatpush1.bf16.msra.mxu1 %v3325_v50  ;;  %2247 = vmatprep.subr.bf16.mxu0 %v3328_v53 }
  0x7e   :  { %2279 = vmatprep.subr.bf16.mxu1 %v3330_v56  ;;  %688 = vmatprep.mubr.f32.mxu0 %v3039_v0 }
  0x7f   :  { %759 = vmatprep.mubr.f32.mxu1 %v3039_v0 }
  0x80   :  { %2249 = vmatpush1.bf16.msra.mxu0 %v3336_v60 }
  0x81   :  { %2281 = vmatpush1.bf16.msra.mxu1 %v3340_v63  ;;  %2251 = vmatprep.subr.bf16.mxu0 %v3344_v3 }
  0x82   :  { %2283 = vmatprep.subr.bf16.mxu1 %v3347_v6 }
  0x84   :  { %2253 = vmatpush1.bf16.msra.mxu0 %v3353_v10 }
  0x85   :  { %2285 = vmatpush1.bf16.msra.mxu1 %v3357_v13  ;;  %2255 = vmatprep.subr.bf16.mxu0 %v3361_v16 }
  0x86   :  { %2287 = vmatprep.subr.bf16.mxu1 %v3364_v19 }
  0x88   :  { %2257 = vmatpush1.bf16.msra.mxu0 %v3370_v23 }
  0x89   :  { %2289 = vmatpush1.bf16.msra.mxu1 %v3374_v26  ;;  %2259 = vmatprep.subr.bf16.mxu0 %v3378_v29 }
  0x8a   :  { %2291 = vmatprep.subr.bf16.mxu1 %v3381_v32 }
  0x8c   :  { %2261 = vmatpush1.bf16.msra.mxu0 %v3387_v36 }
  0x8d   :  { %2293 = vmatpush1.bf16.msra.mxu1 %v3391_v40  ;;  %2263 = vmatprep.subr.bf16.mxu0 %v3395_v44 }
  0x8e   :  { %2295 = vmatprep.subr.bf16.mxu1 %v3398_v48 }
  0x90   :  { %2265 = vmatpush1.bf16.msra.mxu0 %v3404_v54 }
  0x91   :  { %2297 = vmatpush1.bf16.msra.mxu1 %v3408_v58  ;;  %2267 = vmatprep.subr.bf16.mxu0 %v3412_v62 }
  0x92   :  { %2299 = vmatprep.subr.bf16.mxu1 %v3415_v4 }
  0x94   :  { %2269 = vmatpush1.bf16.msra.mxu0 %v3421_v9 }
  0x95   :  { %2301 = vmatpush1.bf16.msra.mxu1 %v3425_v14  ;;  %2271 = vmatprep.subr.bf16.mxu0 %v3429_v18 }
  0x96   :  { %2303 = vmatprep.subr.bf16.mxu1 %v3432_v22 }
  0x98   :  { %2273 = vmatpush1.bf16.msra.mxu0 %v3438_v25 }
  0x99   :  { %2305 = vmatpush1.bf16.msra.mxu1 %v3442_v27  ;;  %2307 = vmatprep.subr.bf16.mxu0 %v3315_v38 }
  0x9a   :  { %2339 = vmatprep.subr.bf16.mxu1 %v3317_v41 }
 0x14e   :  { %v520_v39 = vpop.f32.mrb[0].mxu0 }
 0x14f   :  { %v2754_v43 = vadd.f32 %v520_v39, %v3498_v35  ;;  %v591_v45 = vpop.f32.mrb[0].mxu1  ;;  %v522_v46 = vpop.f32.mrb[1].mxu0 }
 0x150   :  { %v2755_v49 = vadd.f32 %v522_v46, %v3502_v37  ;;  %v593_v51 = vpop.f32.mrb[1].mxu1  ;;  %v2770_v5 = vadd.f32 %v591_v45, %v3511_v1 }
 0x151   :  { %v2053_v52 = vmul.f32 -1.442695, %v2754_v43  ;;  %v2771_v61 = vadd.f32 %v593_v51, %v3507_v57 }
 0x152   :  { %v2054_v55 = vmul.f32 -1.442695, %v2755_v49 }
 0x153   :  { %2828 = vpow2.f32 %v2053_v52  ;;  %v2055_v2 = vmul.f32 -1.442695, %v2771_v61 }
 0x154   :  { %2830 = vpow2.f32 %v2054_v55 }
 0x155   :  { %2832 = vpow2.f32 %v2055_v2 }
 0x156   :  { %2834 = vtanh.f32 %v2770_v5 }
 0x15d   :  { %v2829_v7 = vpop.eup %2828 }
 0x15e   :  { %v2831_v8 = vpop.eup %2830  ;;  %v603_v11 = vadd.f32 1.0, %v2829_v7 }
 0x15f   :  { %v609_v12 = vadd.f32 1.0, %v2831_v8  ;;  %v2833_v15 = vpop.eup %2832 }
 0x160   :  { %2836 = vrcp.f32 %v603_v11  ;;  %v2835_v17 = vpop.eup %2834  ;;  %v616_v28 = vadd.f32 1.0, %v2833_v15 }
 0x161   :  { %2838 = vrcp.f32 %v609_v12 }
 0x162   :  { %2840 = vrcp.f32 %v616_v28 }
 0x16a   :  { %v2837_v20 = vpop.eup %2836 }
 0x16b   :  { %v2839_v21 = vpop.eup %2838  ;;  %v620_v24 = vmul.f32 %v2837_v20, %v2835_v17 }
 0x16c   :  { %v619_v39 = vmul.f32 0.0, %v2839_v21  ;;  %v2841_v42 = vpop.eup %2840 }
 0x16e   :  { %v3514_v33 = vadd.f32 %v620_v24, %v619_v39 }
 0x170   :  { %2842 = vtanh.f32 %v3514_v33 }
 0x17a   :  { %v2843_v43 = vpop.eup %2842 }
 0x17b   :  { %v623_v45 = vmul.f32 %v2843_v43, %v2841_v42 }
 0x17d   :  { %689 = vmatmul.mubr.f32.vlgmr.msra.gmra.mrb[2].mxu0 %v623_v45  ;;  %760 = vmatmul.mubr.f32.vlgmr.msra.gmra.mrb[2].mxu1 %v623_v45 }
 0x17e   :  { %2309 = vmatpush1.bf16.msra.mxu0 %v3322_v47  ;;  %2341 = vmatpush1.bf16.msra.mxu1 %v3325_v50 }
 0x17f   :  { %2311 = vmatprep.subr.bf16.mxu0 %v3328_v53  ;;  %2343 = vmatprep.subr.bf16.mxu1 %v3330_v56 }
 0x180   :  { %858 = vmatprep.mubr.f32.mxu0 %v3039_v0  ;;  %929 = vmatprep.mubr.f32.mxu1 %v3039_v0 }
 0x182   :  { %2313 = vmatpush1.bf16.msra.mxu0 %v3336_v60  ;;  %2345 = vmatpush1.bf16.msra.mxu1 %v3340_v63 }
 0x183   :  { %2315 = vmatprep.subr.bf16.mxu0 %v3344_v3  ;;  %2347 = vmatprep.subr.bf16.mxu1 %v3347_v6 }
 0x186   :  { %2317 = vmatpush1.bf16.msra.mxu0 %v3353_v10  ;;  %2349 = vmatpush1.bf16.msra.mxu1 %v3357_v13 }
 0x187   :  { %2319 = vmatprep.subr.bf16.mxu0 %v3361_v16  ;;  %2351 = vmatprep.subr.bf16.mxu1 %v3364_v19 }
 0x18a   :  { %2321 = vmatpush1.bf16.msra.mxu0 %v3370_v23  ;;  %2353 = vmatpush1.bf16.msra.mxu1 %v3374_v26 }
 0x18b   :  { %2323 = vmatprep.subr.bf16.mxu0 %v3378_v29  ;;  %2355 = vmatprep.subr.bf16.mxu1 %v3381_v32 }
 0x18e   :  { %2325 = vmatpush1.bf16.msra.mxu0 %v3387_v36  ;;  %2357 = vmatpush1.bf16.msra.mxu1 %v3391_v40 }
 0x18f   :  { %2327 = vmatprep.subr.bf16.mxu0 %v3395_v44  ;;  %2359 = vmatprep.subr.bf16.mxu1 %v3398_v48 }
 0x192   :  { %2329 = vmatpush1.bf16.msra.mxu0 %v3404_v54  ;;  %2361 = vmatpush1.bf16.msra.mxu1 %v3408_v58 }
 0x193   :  { %2331 = vmatprep.subr.bf16.mxu0 %v3412_v62  ;;  %2363 = vmatprep.subr.bf16.mxu1 %v3415_v4 }
 0x196   :  { %2333 = vmatpush1.bf16.msra.mxu0 %v3421_v9  ;;  %2365 = vmatpush1.bf16.msra.mxu1 %v3425_v14 }
 0x197   :  { %2335 = vmatprep.subr.bf16.mxu0 %v3429_v18  ;;  %2367 = vmatprep.subr.bf16.mxu1 %v3432_v22 }
 0x19a   :  { %2337 = vmatpush1.bf16.msra.mxu0 %v3438_v25  ;;  %2369 = vmatpush1.bf16.msra.mxu1 %v3442_v27 }
 0x19b   :  { %2371 = vmatprep.subr.bf16.mxu0 %v3315_v38  ;;  %2403 = vmatprep.subr.bf16.mxu1 %v3317_v41 }
 0x250   :  { %v690_v46 = vpop.f32.mrb[2].mxu0  ;;  %v761_v49 = vpop.f32.mrb[2].mxu1 }
 0x251   :  { %v2756_v51 = vadd.f32 %v690_v46, %v3498_v35  ;;  %v692_v52 = vpop.f32.mrb[3].mxu0  ;;  %v763_v55 = vpop.f32.mrb[3].mxu1  ;;  %v2772_v8 = vadd.f32 %v761_v49, %v3511_v1 }
 0x252   :  { %v2757_v59 = vadd.f32 %v692_v52, %v3502_v37  ;;  %v2773_v5 = vadd.f32 %v763_v55, %v3507_v57 }
 0x253   :  { %v2056_v61 = vmul.f32 -1.442695, %v2756_v51 }
 0x254   :  { %v2057_v2 = vmul.f32 -1.442695, %v2757_v59  ;;  %v2058_v7 = vmul.f32 -1.442695, %v2773_v5 }
 0x255   :  { %2844 = vpow2.f32 %v2056_v61 }
 0x256   :  { %2846 = vpow2.f32 %v2057_v2 }
 0x257   :  { %2848 = vpow2.f32 %v2058_v7 }
 0x258   :  { %2850 = vtanh.f32 %v2772_v8 }
 0x25f   :  { %v2845_v11 = vpop.eup %2844 }
 0x260   :  { %v2847_v12 = vpop.eup %2846  ;;  %v773_v15 = vadd.f32 1.0, %v2845_v11 }
 0x261   :  { %v779_v17 = vadd.f32 1.0, %v2847_v12  ;;  %v2849_v20 = vpop.eup %2848 }
 0x262   :  { %2852 = vrcp.f32 %v773_v15  ;;  %v2851_v21 = vpop.eup %2850  ;;  %v786_v42 = vadd.f32 1.0, %v2849_v20 }
 0x263   :  { %2854 = vrcp.f32 %v779_v17 }
 0x264   :  { %2856 = vrcp.f32 %v786_v42 }
 0x26c   :  { %v2853_v24 = vpop.eup %2852 }
 0x26d   :  { %v2855_v28 = vpop.eup %2854  ;;  %v790_v39 = vmul.f32 %v2853_v24, %v2851_v21 }
 0x26e   :  { %v789_v43 = vmul.f32 %v2855_v28, %v3514_v33  ;;  %v2857_v46 = vpop.eup %2856 }
 0x270   :  { %v3556_v45 = vadd.f32 %v790_v39, %v789_v43 }
 0x272   :  { %2858 = vtanh.f32 %v3556_v45 }
 0x27c   :  { %v2859_v49 = vpop.eup %2858 }
 0x27d   :  { %v793_v51 = vmul.f32 %v2859_v49, %v2857_v46 }
 0x27f   :  { %859 = vmatmul.mubr.f32.vlgmr.msra.gmra.mrb[4].mxu0 %v793_v51  ;;  %930 = vmatmul.mubr.f32.vlgmr.msra.gmra.mrb[4].mxu1 %v793_v51 }
 0x280   :  { %2373 = vmatpush1.bf16.msra.mxu0 %v3322_v47  ;;  %2405 = vmatpush1.bf16.msra.mxu1 %v3325_v50 }
 0x281   :  { %2375 = vmatprep.subr.bf16.mxu0 %v3328_v53  ;;  %2407 = vmatprep.subr.bf16.mxu1 %v3330_v56 }
 0x282   :  { %1028 = vmatprep.mubr.f32.mxu0 %v3039_v0  ;;  %1099 = vmatprep.mubr.f32.mxu1 %v3039_v0 }
 0x284   :  { %2377 = vmatpush1.bf16.msra.mxu0 %v3336_v60  ;;  %2409 = vmatpush1.bf16.msra.mxu1 %v3340_v63 }
 0x285   :  { %2379 = vmatprep.subr.bf16.mxu0 %v3344_v3  ;;  %2411 = vmatprep.subr.bf16.mxu1 %v3347_v6 }
 0x288   :  { %2381 = vmatpush1.bf16.msra.mxu0 %v3353_v10  ;;  %2413 = vmatpush1.bf16.msra.mxu1 %v3357_v13 }
 0x289   :  { %2383 = vmatprep.subr.bf16.mxu0 %v3361_v16  ;;  %2415 = vmatprep.subr.bf16.mxu1 %v3364_v19 }
 0x28c   :  { %2385 = vmatpush1.bf16.msra.mxu0 %v3370_v23  ;;  %2417 = vmatpush1.bf16.msra.mxu1 %v3374_v26 }
 0x28d   :  { %2387 = vmatprep.subr.bf16.mxu0 %v3378_v29  ;;  %2419 = vmatprep.subr.bf16.mxu1 %v3381_v32 }
 0x290   :  { %2389 = vmatpush1.bf16.msra.mxu0 %v3387_v36  ;;  %2421 = vmatpush1.bf16.msra.mxu1 %v3391_v40 }
 0x291   :  { %2391 = vmatprep.subr.bf16.mxu0 %v3395_v44  ;;  %2423 = vmatprep.subr.bf16.mxu1 %v3398_v48 }
 0x294   :  { %2393 = vmatpush1.bf16.msra.mxu0 %v3404_v54  ;;  %2425 = vmatpush1.bf16.msra.mxu1 %v3408_v58 }
 0x295   :  { %2395 = vmatprep.subr.bf16.mxu0 %v3412_v62  ;;  %2427 = vmatprep.subr.bf16.mxu1 %v3415_v4 }
 0x298   :  { %2397 = vmatpush1.bf16.msra.mxu0 %v3421_v9  ;;  %2429 = vmatpush1.bf16.msra.mxu1 %v3425_v14 }
 0x299   :  { %2399 = vmatprep.subr.bf16.mxu0 %v3429_v18  ;;  %2431 = vmatprep.subr.bf16.mxu1 %v3432_v22 }
 0x29c   :  { %2401 = vmatpush1.bf16.msra.mxu0 %v3438_v25  ;;  %2433 = vmatpush1.bf16.msra.mxu1 %v3442_v27 }
 0x29d   :  { %2435 = vmatprep.subr.bf16.mxu0 %v3315_v38  ;;  %2467 = vmatprep.subr.bf16.mxu1 %v3317_v41 }
 0x352   :  { %v860_v33 = vpop.f32.mrb[4].mxu0  ;;  %v931_v52 = vpop.f32.mrb[4].mxu1 }
 0x353   :  { %v2758_v55 = vadd.f32 %v860_v33, %v3498_v35  ;;  %v862_v59 = vpop.f32.mrb[5].mxu0  ;;  %v933_v61 = vpop.f32.mrb[5].mxu1  ;;  %v2774_v12 = vadd.f32 %v931_v52, %v3511_v1 }
 0x354   :  { %v2759_v2 = vadd.f32 %v862_v59, %v3502_v37  ;;  %v2775_v8 = vadd.f32 %v933_v61, %v3507_v57 }
 0x355   :  { %v2059_v5 = vmul.f32 -1.442695, %v2758_v55 }
 0x356   :  { %v2060_v7 = vmul.f32 -1.442695, %v2759_v2  ;;  %v2061_v11 = vmul.f32 -1.442695, %v2775_v8 }
 0x357   :  { %2860 = vpow2.f32 %v2059_v5 }
 0x358   :  { %2862 = vpow2.f32 %v2060_v7 }
 0x359   :  { %2864 = vpow2.f32 %v2061_v11 }
 0x35a   :  { %2866 = vtanh.f32 %v2774_v12 }
 0x361   :  { %v2861_v15 = vpop.eup %2860 }
 0x362   :  { %v2863_v17 = vpop.eup %2862  ;;  %v943_v20 = vadd.f32 1.0, %v2861_v15 }
 0x363   :  { %v949_v21 = vadd.f32 1.0, %v2863_v17  ;;  %v2865_v24 = vpop.eup %2864 }
 0x364   :  { %2868 = vrcp.f32 %v943_v20  ;;  %v2867_v28 = vpop.eup %2866  ;;  %v956_v46 = vadd.f32 1.0, %v2865_v24 }
 0x365   :  { %2870 = vrcp.f32 %v949_v21 }
 0x366   :  { %2872 = vrcp.f32 %v956_v46 }
 0x36e   :  { %v2869_v39 = vpop.eup %2868 }
 0x36f   :  { %v2871_v42 = vpop.eup %2870  ;;  %v960_v43 = vmul.f32 %v2869_v39, %v2867_v28 }
 0x370   :  { %v959_v49 = vmul.f32 %v2871_v42, %v3556_v45  ;;  %v2873_v33 = vpop.eup %2872 }
 0x372   :  { %v3598_v51 = vadd.f32 %v960_v43, %v959_v49 }
 0x374   :  { %2874 = vtanh.f32 %v3598_v51 }
 0x37e   :  { %v2875_v52 = vpop.eup %2874 }
 0x37f   :  { %v963_v55 = vmul.f32 %v2875_v52, %v2873_v33 }
 0x381   :  { %1029 = vmatmul.mubr.f32.vlgmr.msra.gmra.mrb[6].mxu0 %v963_v55  ;;  %1100 = vmatmul.mubr.f32.vlgmr.msra.gmra.mrb[6].mxu1 %v963_v55 }
 0x382   :  { %2437 = vmatpush1.bf16.msra.mxu0 %v3322_v47  ;;  %2469 = vmatpush1.bf16.msra.mxu1 %v3325_v50 }
 0x383   :  { %2439 = vmatprep.subr.bf16.mxu0 %v3328_v53  ;;  %2471 = vmatprep.subr.bf16.mxu1 %v3330_v56 }
 0x384   :  { %1198 = vmatprep.mubr.f32.mxu0 %v3039_v0  ;;  %1269 = vmatprep.mubr.f32.mxu1 %v3039_v0 }
 0x386   :  { %2441 = vmatpush1.bf16.msra.mxu0 %v3336_v60  ;;  %2473 = vmatpush1.bf16.msra.mxu1 %v3340_v63 }
 0x387   :  { %2443 = vmatprep.subr.bf16.mxu0 %v3344_v3  ;;  %2475 = vmatprep.subr.bf16.mxu1 %v3347_v6 }
 0x38a   :  { %2445 = vmatpush1.bf16.msra.mxu0 %v3353_v10  ;;  %2477 = vmatpush1.bf16.msra.mxu1 %v3357_v13 }
 0x38b   :  { %2447 = vmatprep.subr.bf16.mxu0 %v3361_v16  ;;  %2479 = vmatprep.subr.bf16.mxu1 %v3364_v19 }
 0x38e   :  { %2449 = vmatpush1.bf16.msra.mxu0 %v3370_v23  ;;  %2481 = vmatpush1.bf16.msra.mxu1 %v3374_v26 }
 0x38f   :  { %2451 = vmatprep.subr.bf16.mxu0 %v3378_v29  ;;  %2483 = vmatprep.subr.bf16.mxu1 %v3381_v32 }
 0x392   :  { %2453 = vmatpush1.bf16.msra.mxu0 %v3387_v36  ;;  %2485 = vmatpush1.bf16.msra.mxu1 %v3391_v40 }
 0x393   :  { %2455 = vmatprep.subr.bf16.mxu0 %v3395_v44  ;;  %2487 = vmatprep.subr.bf16.mxu1 %v3398_v48 }
 0x396   :  { %2457 = vmatpush1.bf16.msra.mxu0 %v3404_v54  ;;  %2489 = vmatpush1.bf16.msra.mxu1 %v3408_v58 }
 0x397   :  { %2459 = vmatprep.subr.bf16.mxu0 %v3412_v62  ;;  %2491 = vmatprep.subr.bf16.mxu1 %v3415_v4 }
 0x39a   :  { %2461 = vmatpush1.bf16.msra.mxu0 %v3421_v9  ;;  %2493 = vmatpush1.bf16.msra.mxu1 %v3425_v14 }
 0x39b   :  { %2463 = vmatprep.subr.bf16.mxu0 %v3429_v18  ;;  %2495 = vmatprep.subr.bf16.mxu1 %v3432_v22 }
 0x39e   :  { %2465 = vmatpush1.bf16.msra.mxu0 %v3438_v25  ;;  %2497 = vmatpush1.bf16.msra.mxu1 %v3442_v27 }
 0x39f   :  { %2499 = vmatprep.subr.bf16.mxu0 %v3315_v38  ;;  %2531 = vmatprep.subr.bf16.mxu1 %v3317_v41 }
 0x454   :  { %v1030_v45 = vpop.f32.mrb[6].mxu0  ;;  %v1101_v59 = vpop.f32.mrb[6].mxu1 }
 0x455   :  { %v2760_v61 = vadd.f32 %v1030_v45, %v3498_v35  ;;  %v1032_v2 = vpop.f32.mrb[7].mxu0  ;;  %v1103_v5 = vpop.f32.mrb[7].mxu1  ;;  %v2776_v17 = vadd.f32 %v1101_v59, %v3511_v1 }
 0x456   :  { %v2761_v7 = vadd.f32 %v1032_v2, %v3502_v37  ;;  %v2777_v12 = vadd.f32 %v1103_v5, %v3507_v57 }
 0x457   :  { %v2062_v8 = vmul.f32 -1.442695, %v2760_v61 }
 0x458   :  { %v2063_v11 = vmul.f32 -1.442695, %v2761_v7  ;;  %v2064_v15 = vmul.f32 -1.442695, %v2777_v12 }
 0x459   :  { %2876 = vpow2.f32 %v2062_v8 }
 0x45a   :  { %2878 = vpow2.f32 %v2063_v11 }
 0x45b   :  { %2880 = vpow2.f32 %v2064_v15 }
 0x45c   :  { %2882 = vtanh.f32 %v2776_v17 }
 0x463   :  { %v2877_v20 = vpop.eup %2876 }
 0x464   :  { %v2879_v21 = vpop.eup %2878  ;;  %v1113_v24 = vadd.f32 1.0, %v2877_v20 }
 0x465   :  { %v1119_v28 = vadd.f32 1.0, %v2879_v21  ;;  %v2881_v39 = vpop.eup %2880 }
 0x466   :  { %2884 = vrcp.f32 %v1113_v24  ;;  %v2883_v42 = vpop.eup %2882  ;;  %v1126_v33 = vadd.f32 1.0, %v2881_v39 }
 0x467   :  { %2886 = vrcp.f32 %v1119_v28 }
 0x468   :  { %2888 = vrcp.f32 %v1126_v33 }
 0x470   :  { %v2885_v43 = vpop.eup %2884 }
 0x471   :  { %v2887_v46 = vpop.eup %2886  ;;  %v1130_v49 = vmul.f32 %v2885_v43, %v2883_v42 }
 0x472   :  { %v1129_v52 = vmul.f32 %v2887_v46, %v3598_v51  ;;  %v2889_v45 = vpop.eup %2888 }
 0x474   :  { %v3640_v55 = vadd.f32 %v1130_v49, %v1129_v52 }
 0x476   :  { %2890 = vtanh.f32 %v3640_v55 }
 0x480   :  { %v2891_v59 = vpop.eup %2890 }
 0x481   :  { %v1133_v61 = vmul.f32 %v2891_v59, %v2889_v45 }
 0x483   :  { %1199 = vmatmul.mubr.f32.vlgmr.msra.gmra.mrb[8].mxu0 %v1133_v61  ;;  %1270 = vmatmul.mubr.f32.vlgmr.msra.gmra.mrb[8].mxu1 %v1133_v61 }
 0x484   :  { %2501 = vmatpush1.bf16.msra.mxu0 %v3322_v47  ;;  %2533 = vmatpush1.bf16.msra.mxu1 %v3325_v50 }
 0x485   :  { %2503 = vmatprep.subr.bf16.mxu0 %v3328_v53  ;;  %2535 = vmatprep.subr.bf16.mxu1 %v3330_v56 }
 0x486   :  { %1368 = vmatprep.mubr.f32.mxu0 %v3039_v0  ;;  %1439 = vmatprep.mubr.f32.mxu1 %v3039_v0 }
 0x488   :  { %2505 = vmatpush1.bf16.msra.mxu0 %v3336_v60  ;;  %2537 = vmatpush1.bf16.msra.mxu1 %v3340_v63 }
 0x489   :  { %2507 = vmatprep.subr.bf16.mxu0 %v3344_v3  ;;  %2539 = vmatprep.subr.bf16.mxu1 %v3347_v6 }
 0x48c   :  { %2509 = vmatpush1.bf16.msra.mxu0 %v3353_v10  ;;  %2541 = vmatpush1.bf16.msra.mxu1 %v3357_v13 }
 0x48d   :  { %2511 = vmatprep.subr.bf16.mxu0 %v3361_v16  ;;  %2543 = vmatprep.subr.bf16.mxu1 %v3364_v19 }
 0x490   :  { %2513 = vmatpush1.bf16.msra.mxu0 %v3370_v23  ;;  %2545 = vmatpush1.bf16.msra.mxu1 %v3374_v26 }
 0x491   :  { %2515 = vmatprep.subr.bf16.mxu0 %v3378_v29  ;;  %2547 = vmatprep.subr.bf16.mxu1 %v3381_v32 }
 0x494   :  { %2517 = vmatpush1.bf16.msra.mxu0 %v3387_v36  ;;  %2549 = vmatpush1.bf16.msra.mxu1 %v3391_v40 }
 0x495   :  { %2519 = vmatprep.subr.bf16.mxu0 %v3395_v44  ;;  %2551 = vmatprep.subr.bf16.mxu1 %v3398_v48 }
 0x498   :  { %2521 = vmatpush1.bf16.msra.mxu0 %v3404_v54  ;;  %2553 = vmatpush1.bf16.msra.mxu1 %v3408_v58 }
 0x499   :  { %2523 = vmatprep.subr.bf16.mxu0 %v3412_v62  ;;  %2555 = vmatprep.subr.bf16.mxu1 %v3415_v4 }
 0x49c   :  { %2525 = vmatpush1.bf16.msra.mxu0 %v3421_v9  ;;  %2557 = vmatpush1.bf16.msra.mxu1 %v3425_v14 }
 0x49d   :  { %2527 = vmatprep.subr.bf16.mxu0 %v3429_v18  ;;  %2559 = vmatprep.subr.bf16.mxu1 %v3432_v22 }
 0x4a0   :  { %2529 = vmatpush1.bf16.msra.mxu0 %v3438_v25  ;;  %2561 = vmatpush1.bf16.msra.mxu1 %v3442_v27 }
 0x4a1   :  { %2563 = vmatprep.subr.bf16.mxu0 %v3315_v38  ;;  %2595 = vmatprep.subr.bf16.mxu1 %v3317_v41 }
 0x556   :  { %v1200_v51 = vpop.f32.mrb[8].mxu0  ;;  %v1271_v2 = vpop.f32.mrb[8].mxu1 }
 0x557   :  { %v2762_v5 = vadd.f32 %v1200_v51, %v3498_v35  ;;  %v1202_v7 = vpop.f32.mrb[9].mxu0  ;;  %v1273_v8 = vpop.f32.mrb[9].mxu1  ;;  %v2778_v21 = vadd.f32 %v1271_v2, %v3511_v1 }
 0x558   :  { %v2763_v11 = vadd.f32 %v1202_v7, %v3502_v37  ;;  %v2779_v17 = vadd.f32 %v1273_v8, %v3507_v57 }
 0x559   :  { %v2065_v12 = vmul.f32 -1.442695, %v2762_v5 }
 0x55a   :  { %v2066_v15 = vmul.f32 -1.442695, %v2763_v11  ;;  %v2067_v20 = vmul.f32 -1.442695, %v2779_v17 }
 0x55b   :  { %2892 = vpow2.f32 %v2065_v12 }
 0x55c   :  { %2894 = vpow2.f32 %v2066_v15 }
 0x55d   :  { %2896 = vpow2.f32 %v2067_v20 }
 0x55e   :  { %2898 = vtanh.f32 %v2778_v21 }
 0x565   :  { %v2893_v24 = vpop.eup %2892 }
 0x566   :  { %v2895_v28 = vpop.eup %2894  ;;  %v1283_v39 = vadd.f32 1.0, %v2893_v24 }
 0x567   :  { %v1289_v42 = vadd.f32 1.0, %v2895_v28  ;;  %v2897_v43 = vpop.eup %2896 }
 0x568   :  { %2900 = vrcp.f32 %v1283_v39  ;;  %v2899_v46 = vpop.eup %2898  ;;  %v1296_v45 = vadd.f32 1.0, %v2897_v43 }
 0x569   :  { %2902 = vrcp.f32 %v1289_v42 }
 0x56a   :  { %2904 = vrcp.f32 %v1296_v45 }
 0x572   :  { %v2901_v49 = vpop.eup %2900 }
 0x573   :  { %v2903_v33 = vpop.eup %2902  ;;  %v1300_v52 = vmul.f32 %v2901_v49, %v2899_v46 }
 0x574   :  { %v1299_v59 = vmul.f32 %v2903_v33, %v3640_v55  ;;  %v2905_v51 = vpop.eup %2904 }
 0x576   :  { %v3682_v61 = vadd.f32 %v1300_v52, %v1299_v59 }
 0x578   :  { %2906 = vtanh.f32 %v3682_v61 }
 0x582   :  { %v2907_v2 = vpop.eup %2906 }
 0x583   :  { %v1303_v5 = vmul.f32 %v2907_v2, %v2905_v51 }
 0x585   :  { %1369 = vmatmul.mubr.f32.vlgmr.msra.gmra.mrb[10].mxu0 %v1303_v5  ;;  %1440 = vmatmul.mubr.f32.vlgmr.msra.gmra.mrb[10].mxu1 %v1303_v5 }
 0x586   :  { %2565 = vmatpush1.bf16.msra.mxu0 %v3322_v47  ;;  %2597 = vmatpush1.bf16.msra.mxu1 %v3325_v50 }
 0x587   :  { %2567 = vmatprep.subr.bf16.mxu0 %v3328_v53  ;;  %2599 = vmatprep.subr.bf16.mxu1 %v3330_v56 }
 0x588   :  { %1538 = vmatprep.mubr.f32.mxu0 %v3039_v0  ;;  %1609 = vmatprep.mubr.f32.mxu1 %v3039_v0 }
 0x58a   :  { %2569 = vmatpush1.bf16.msra.mxu0 %v3336_v60  ;;  %2601 = vmatpush1.bf16.msra.mxu1 %v3340_v63 }
 0x58b   :  { %2571 = vmatprep.subr.bf16.mxu0 %v3344_v3  ;;  %2603 = vmatprep.subr.bf16.mxu1 %v3347_v6 }
 0x58e   :  { %2573 = vmatpush1.bf16.msra.mxu0 %v3353_v10  ;;  %2605 = vmatpush1.bf16.msra.mxu1 %v3357_v13 }
 0x58f   :  { %2575 = vmatprep.subr.bf16.mxu0 %v3361_v16  ;;  %2607 = vmatprep.subr.bf16.mxu1 %v3364_v19 }
 0x592   :  { %2577 = vmatpush1.bf16.msra.mxu0 %v3370_v23  ;;  %2609 = vmatpush1.bf16.msra.mxu1 %v3374_v26 }
 0x593   :  { %2579 = vmatprep.subr.bf16.mxu0 %v3378_v29  ;;  %2611 = vmatprep.subr.bf16.mxu1 %v3381_v32 }
 0x596   :  { %2581 = vmatpush1.bf16.msra.mxu0 %v3387_v36  ;;  %2613 = vmatpush1.bf16.msra.mxu1 %v3391_v40 }
 0x597   :  { %2583 = vmatprep.subr.bf16.mxu0 %v3395_v44  ;;  %2615 = vmatprep.subr.bf16.mxu1 %v3398_v48 }
 0x59a   :  { %2585 = vmatpush1.bf16.msra.mxu0 %v3404_v54  ;;  %2617 = vmatpush1.bf16.msra.mxu1 %v3408_v58 }
 0x59b   :  { %2587 = vmatprep.subr.bf16.mxu0 %v3412_v62  ;;  %2619 = vmatprep.subr.bf16.mxu1 %v3415_v4 }
 0x59e   :  { %2589 = vmatpush1.bf16.msra.mxu0 %v3421_v9  ;;  %2621 = vmatpush1.bf16.msra.mxu1 %v3425_v14 }
 0x59f   :  { %2591 = vmatprep.subr.bf16.mxu0 %v3429_v18  ;;  %2623 = vmatprep.subr.bf16.mxu1 %v3432_v22 }
 0x5a2   :  { %2593 = vmatpush1.bf16.msra.mxu0 %v3438_v25  ;;  %2625 = vmatpush1.bf16.msra.mxu1 %v3442_v27 }
 0x5a3   :  { %2627 = vmatprep.subr.bf16.mxu0 %v3315_v38  ;;  %2659 = vmatprep.subr.bf16.mxu1 %v3317_v41 }
 0x658   :  { %v1370_v55 = vpop.f32.mrb[10].mxu0  ;;  %v1441_v7 = vpop.f32.mrb[10].mxu1 }
 0x659   :  { %v2764_v8 = vadd.f32 %v1370_v55, %v3498_v35  ;;  %v1372_v11 = vpop.f32.mrb[11].mxu0  ;;  %v1443_v12 = vpop.f32.mrb[11].mxu1  ;;  %v2780_v28 = vadd.f32 %v1441_v7, %v3511_v1 }
 0x65a   :  { %v2765_v15 = vadd.f32 %v1372_v11, %v3502_v37  ;;  %v2781_v21 = vadd.f32 %v1443_v12, %v3507_v57  ;;  %v1821_v11 = vld [vmem:[#allocation4 + $0x38] sm:$0xff] }
 0x65b   :  { %v2068_v17 = vmul.f32 -1.442695, %v2764_v8  ;;  %v1819_v8 = vld [vmem:[#allocation4 + $0x28] sm:$0xff] }
 0x65c   :  { %v2069_v20 = vmul.f32 -1.442695, %v2765_v15  ;;  %v2070_v24 = vmul.f32 -1.442695, %v2781_v21  ;;  %v2694_v12 = vpack.c.bf16 %v1821_v11, %v1819_v8  ;;  %v1818_v15 = vld [vmem:[#allocation4 + $0x20] sm:$0xff]  ;;  %v1823_v21 = vld [vmem:[#allocation4 + $0x48] sm:$0xff] }
 0x65d   :  { %2908 = vpow2.f32 %v2068_v17  ;;  %v1820_v17 = vld [vmem:[#allocation4 + $0x30] sm:$0xff]  ;;  %v1935_v11 = vld [vmem:[#allocation6 + $0x20] sm:$0xff] }
 0x65e   :  { %2910 = vpow2.f32 %v2069_v20  ;;  %v2696_v20 = vpack.c.bf16 %v1820_v17, %v1818_v15  ;;  %v1953_v15 = vld [vmem:[#allocation6 + $0xb0] sm:$0xff]  ;;  %v1954_v17 = vld [vmem:[#allocation6 + $0xb8] sm:$0xff] }
 0x65f   :  { %2912 = vpow2.f32 %v2070_v24  ;;  %v1825_v24 = vld [vmem:[#allocation4 + $0x58] sm:$0xff] }
 0x660   :  { %2914 = vtanh.f32 %v2780_v28  ;;  %v2698_v28 = vpack.c.bf16 %v1825_v24, %v1823_v21  ;;  %v2734_v21 = vpack.c.bf16 %v1954_v17, %v1953_v15  ;;  %v1937_v24 = vld [vmem:[#allocation6 + $0x30] sm:$0xff] }
 0x667   :  { %v2909_v38 = vpop.eup %2908 }
 0x668   :  { %v2911_v39 = vpop.eup %2910  ;;  %v1453_v41 = vadd.f32 1.0, %v2909_v38  ;;  %v1824_v38 = vld [vmem:[#allocation4 + $0x50] sm:$0xff] }
 0x669   :  { %v1459_v42 = vadd.f32 1.0, %v2911_v39  ;;  %v2913_v43 = vpop.eup %2912 }
 0x66a   :  { %2916 = vrcp.f32 %v1453_v41  ;;  %v2915_v46 = vpop.eup %2914  ;;  %v1466_v45 = vadd.f32 1.0, %v2913_v43  ;;  %v1827_v41 = vld [vmem:[#allocation4 + $0x68] sm:$0xff] }
 0x66b   :  { %2918 = vrcp.f32 %v1459_v42  ;;  %v1829_v42 = vld [vmem:[#allocation4 + $0x78] sm:$0xff] }
 0x66c   :  { %2920 = vrcp.f32 %v1466_v45  ;;  %v2702_v43 = vpack.c.bf16 %v1829_v42, %v1827_v41  ;;  %v1833_v45 = vld [vmem:[#allocation4 + $0x98] sm:$0xff]  ;;  %v1939_v42 = vld [vmem:[#allocation6 + $0x40] sm:$0xff] }
 0x674   :  { %v2917_v49 = vpop.eup %2916 }
 0x675   :  { %v2919_v33 = vpop.eup %2918  ;;  %v1470_v52 = vmul.f32 %v2917_v49, %v2915_v46  ;;  %v1826_v46 = vld [vmem:[#allocation4 + $0x60] sm:$0xff]  ;;  %v1828_v49 = vld [vmem:[#allocation4 + $0x70] sm:$0xff] }
 0x676   :  { %v1469_v59 = vmul.f32 %v2919_v33, %v3682_v61  ;;  %v2921_v2 = vpop.eup %2920  ;;  %v1816_v61 = vld [vmem:[#allocation4 + $0x10] sm:$0xff]  ;;  %v2704_v33 = vpack.c.bf16 %v1828_v49, %v1826_v46  ;;  %v1958_v49 = vld [vmem:[#allocation6 + $0xd8] sm:$0xff] }
 0x677   :  { %v1957_v46 = vld [vmem:[#allocation6 + $0xd0] sm:$0xff] }
 0x678   :  { %v3724_v51 = vadd.f32 %v1470_v52, %v1469_v59  ;;  %v1831_v52 = vld [vmem:[#allocation4 + $0x88] sm:$0xff] }
 0x679   :  { %v2706_v59 = vpack.c.bf16 %v1833_v45, %v1831_v52  ;;  %v2742_v52 = vpack.c.bf16 %v1958_v49, %v1957_v46  ;;  %v1941_v45 = vld [vmem:[#allocation6 + $0x50] sm:$0xff] }
 0x67a   :  { %2922 = vtanh.f32 %v3724_v51 }
 0x684   :  { %v2923_v5 = vpop.eup %2922 }
 0x685   :  { %v1473_v55 = vmul.f32 %v2923_v5, %v2921_v2  ;;  %v1832_v2 = vld [vmem:[#allocation4 + $0x90] sm:$0xff] }
 0x687   :  { %1539 = vmatmul.mubr.f32.vlgmr.msra.gmra.mrb[12].mxu0 %v1473_v55  ;;  %1610 = vmatmul.mubr.f32.vlgmr.msra.gmra.mrb[12].mxu1 %v1473_v55  ;;  %v1835_v55 = vld [vmem:[#allocation4 + $0xa8] sm:$0xff] }
 0x688   :  { %2629 = vmatpush1.bf16.msra.mxu0 %v3322_v47  ;;  %2661 = vmatpush1.bf16.msra.mxu1 %v3325_v50 }
 0x689   :  { %2631 = vmatprep.subr.bf16.mxu0 %v3328_v53  ;;  %2663 = vmatprep.subr.bf16.mxu1 %v3330_v56 }
 0x68a   :  { %1708 = vmatprep.mubr.f32.mxu0 %v3039_v0  ;;  %1779 = vmatprep.mubr.f32.mxu1 %v3039_v0 }
 0x68c   :  { %2633 = vmatpush1.bf16.msra.mxu0 %v3336_v60  ;;  %2665 = vmatpush1.bf16.msra.mxu1 %v3340_v63 }
 0x68d   :  { %2635 = vmatprep.subr.bf16.mxu0 %v3344_v3  ;;  %2667 = vmatprep.subr.bf16.mxu1 %v3347_v6 }
 0x690   :  { %2637 = vmatpush1.bf16.msra.mxu0 %v3353_v10  ;;  %2669 = vmatpush1.bf16.msra.mxu1 %v3357_v13 }
 0x691   :  { %2639 = vmatprep.subr.bf16.mxu0 %v3361_v16  ;;  %2671 = vmatprep.subr.bf16.mxu1 %v3364_v19 }
 0x694   :  { %2641 = vmatpush1.bf16.msra.mxu0 %v3370_v23  ;;  %2673 = vmatpush1.bf16.msra.mxu1 %v3374_v26 }
 0x695   :  { %2643 = vmatprep.subr.bf16.mxu0 %v3378_v29  ;;  %2675 = vmatprep.subr.bf16.mxu1 %v3381_v32 }
 0x698   :  { %2645 = vmatpush1.bf16.msra.mxu0 %v3387_v36  ;;  %2677 = vmatpush1.bf16.msra.mxu1 %v3391_v40 }
 0x699   :  { %2647 = vmatprep.subr.bf16.mxu0 %v3395_v44  ;;  %2679 = vmatprep.subr.bf16.mxu1 %v3398_v48 }
 0x69c   :  { %2649 = vmatpush1.bf16.msra.mxu0 %v3404_v54  ;;  %2681 = vmatpush1.bf16.msra.mxu1 %v3408_v58 }
 0x69d   :  { %2651 = vmatprep.subr.bf16.mxu0 %v3412_v62  ;;  %2683 = vmatprep.subr.bf16.mxu1 %v3415_v4 }
 0x6a0   :  { %2653 = vmatpush1.bf16.msra.mxu0 %v3421_v9  ;;  %2685 = vmatpush1.bf16.msra.mxu1 %v3425_v14 }
 0x6a1   :  { %2655 = vmatprep.subr.bf16.mxu0 %v3429_v18  ;;  %2687 = vmatprep.subr.bf16.mxu1 %v3432_v22  ;;  %v1815_v18 = vld [vmem:[#allocation4 + $0x8] sm:$0xff]  ;;  %v1817_v22 = vld [vmem:[#allocation4 + $0x18] sm:$0xff] }
 0x6a4   :  { %2657 = vmatpush1.bf16.msra.mxu0 %v3438_v25  ;;  %2689 = vmatpush1.bf16.msra.mxu1 %v3442_v27  ;;  %v2690_v25 = vpack.c.bf16 %v1817_v22, %v1815_v18  ;;  %v1814_v27 = vld [vmem:[#allocation4] sm:$0xff]  ;;  %v1933_v22 = vld [vmem:[#allocation6 + $0x10] sm:$0xff] }
 0x6a5   :  { %v2692_v7 = vpack.c.bf16 %v1816_v61, %v1814_v27  ;;  %v1951_v27 = vld [vmem:[#allocation6 + $0xa0] sm:$0xff]  ;;  %v1952_v61 = vld [vmem:[#allocation6 + $0xa8] sm:$0xff] }
 0x6a6   :  { %2691 = vmatprep.subr.bf16.mxu0 %v2690_v25  ;;  %v1934_v25 = vld [vmem:[#allocation6 + $0x18] sm:$0xff]  ;;  %v2730_v8 = vpack.c.bf16 %v1952_v61, %v1951_v27  ;;  %v1945_v27 = vld [vmem:[#allocation6 + $0x70] sm:$0xff] }
 0x6a7   :  { %v1946_v61 = vld [vmem:[#allocation6 + $0x78] sm:$0xff] }
 0x75a   :  { %v1540_v47 = vpop.f32.mrb[12].mxu0  ;;  %v1611_v50 = vpop.f32.mrb[12].mxu1 }
 0x75b   :  { %v2766_v53 = vadd.f32 %v1540_v47, %v3498_v35  ;;  %v1542_v56 = vpop.f32.mrb[13].mxu0  ;;  %v1613_v60 = vpop.f32.mrb[13].mxu1  ;;  %v2782_v16 = vadd.f32 %v1611_v50, %v3511_v1  ;;  %v1837_v47 = vld [vmem:[#allocation4 + $0xb8] sm:$0xff] }
 0x75c   :  { %v2767_v63 = vadd.f32 %v1542_v56, %v3502_v37  ;;  %v2783_v10 = vadd.f32 %v1613_v60, %v3507_v57  ;;  %v2710_v50 = vpack.c.bf16 %v1837_v47, %v1835_v55  ;;  %v1836_v56 = vld [vmem:[#allocation4 + $0xb0] sm:$0xff]  ;;  %v1839_v60 = vld [vmem:[#allocation4 + $0xc8] sm:$0xff] }
 0x75d   :  { %v2071_v3 = vmul.f32 -1.442695, %v2766_v53  ;;  %v1834_v53 = vld [vmem:[#allocation4 + $0xa0] sm:$0xff] }
 0x75e   :  { %v2072_v6 = vmul.f32 -1.442695, %v2767_v63  ;;  %v2073_v13 = vmul.f32 -1.442695, %v2783_v10  ;;  %v2712_v63 = vpack.c.bf16 %v1836_v56, %v1834_v53  ;;  %v1840_v10 = vld [vmem:[#allocation4 + $0xd0] sm:$0xff] }
 0x75f   :  { %2924 = vpow2.f32 %v2071_v3  ;;  %v1841_v3 = vld [vmem:[#allocation4 + $0xd8] sm:$0xff] }
 0x760   :  { %2926 = vpow2.f32 %v2072_v6  ;;  %v1838_v6 = vld [vmem:[#allocation4 + $0xc0] sm:$0xff] }
 0x761   :  { %2928 = vpow2.f32 %v2073_v13  ;;  %v2714_v13 = vpack.c.bf16 %v1841_v3, %v1839_v60 }
 0x762   :  { %2930 = vtanh.f32 %v2782_v16  ;;  %v1843_v16 = vld [vmem:[#allocation4 + $0xe8] sm:$0xff] }
 0x769   :  { %v2925_v19 = vpop.eup %2924 }
 0x76a   :  { %v2927_v23 = vpop.eup %2926  ;;  %v1623_v26 = vadd.f32 1.0, %v2925_v19  ;;  %v1845_v19 = vld [vmem:[#allocation4 + $0xf8] sm:$0xff] }
 0x76b   :  { %v1629_v29 = vadd.f32 1.0, %v2927_v23  ;;  %v2929_v32 = vpop.eup %2928  ;;  %v2716_v23 = vpack.c.bf16 %v1840_v10, %v1838_v6 }
 0x76c   :  { %2932 = vrcp.f32 %v1623_v26  ;;  %v2931_v36 = vpop.eup %2930  ;;  %v1636_v54 = vadd.f32 1.0, %v2929_v32  ;;  %v2718_v26 = vpack.c.bf16 %v1845_v19, %v1843_v16  ;;  %v1844_v32 = vld [vmem:[#allocation4 + $0xf0] sm:$0xff] }
 0x76d   :  { %2934 = vrcp.f32 %v1629_v29  ;;  %v1842_v29 = vld [vmem:[#allocation4 + $0xe0] sm:$0xff] }
 0x76e   :  { %2936 = vrcp.f32 %v1636_v54 }
 0x776   :  { %v2933_v40 = vpop.eup %2932 }
 0x777   :  { %v2935_v44 = vpop.eup %2934  ;;  %v1640_v48 = vmul.f32 %v2933_v40, %v2931_v36  ;;  %v2720_v36 = vpack.c.bf16 %v1844_v32, %v1842_v29  ;;  %v1947_v40 = vld [vmem:[#allocation6 + $0x80] sm:$0xff] }
 0x778   :  { %v1639_v58 = vmul.f32 %v2935_v44, %v3724_v51  ;;  %v2937_v4 = vpop.eup %2936  ;;  %v1830_v51 = vld [vmem:[#allocation4 + $0x80] sm:$0xff]  ;;  %v1948_v44 = vld [vmem:[#allocation6 + $0x88] sm:$0xff] }
 0x779   :  { %v2708_v5 = vpack.c.bf16 %v1832_v2, %v1830_v51  ;;  %v2722_v54 = vpack.c.bf16 %v1948_v44, %v1947_v40  ;;  %v1959_v51 = vld [vmem:[#allocation6 + $0xe0] sm:$0xff]  ;;  %v1960_v2 = vld [vmem:[#allocation6 + $0xe8] sm:$0xff] }
 0x77a   :  { %v3764_v62 = vadd.f32 %v1640_v48, %v1639_v58  ;;  %v1931_v48 = vld [vmem:[#allocation6] sm:$0xff]  ;;  %v1932_v58 = vld [vmem:[#allocation6 + $0x8] sm:$0xff]  ;;  %v2746_v55 = vpack.c.bf16 %v1960_v2, %v1959_v51 }
 0x77b   :  { %2723 = vmatprep.subr.bf16.mxu1 %v2722_v54 }
 0x77c   :  { %2938 = vtanh.f32 %v3764_v62 }
 0x786   :  { %v2939_v9 = vpop.eup %2938 }
 0x787   :  { %v1643_v14 = vmul.f32 %v2939_v9, %v2937_v4  ;;  %v1949_v4 = vld [vmem:[#allocation6 + $0x90] sm:$0xff]  ;;  %v1950_v9 = vld [vmem:[#allocation6 + $0x98] sm:$0xff] }
 0x788   :  { %v2726_v18 = vpack.c.bf16 %v1950_v9, %v1949_v4  ;;  %v1943_v4 = vld [vmem:[#allocation6 + $0x60] sm:$0xff]  ;;  %v1944_v9 = vld [vmem:[#allocation6 + $0x68] sm:$0xff] }
 0x789   :  { %1709 = vmatmul.mubr.f32.vlgmr.msra.gmra.mrb[14].mxu0 %v1643_v14  ;;  %1780 = vmatmul.mubr.f32.vlgmr.msra.gmra.mrb[14].mxu1 %v1643_v14  ;;  %v2724_v14 = vpack.c.bf16 %v1932_v58, %v1931_v48 }
 0x78a   :  { %1922 = vmatprep.mubr.f32.mxu0 %v3039_v0  ;;  %2693 = vmatpush1.bf16.msra.mxu0 %v2692_v7  ;;  %v1822_v0 = vld [vmem:[#allocation4 + $0x40] sm:$0xff]  ;;  %v2728_v7 = vpack.c.bf16 %v1934_v25, %v1933_v22  ;;  %v1962_v22 = vld [vmem:[#allocation6 + $0xf8] sm:$0xff] }
 0x78b   :  { %2695 = vmatprep.subr.bf16.mxu0 %v2694_v12  ;;  %v2700_v39 = vpack.c.bf16 %v1824_v38, %v1822_v0  ;;  %2725 = vmatpush3.bf16.msra.mxu1 %v2724_v14  ;;  %v1936_v12 = vld [vmem:[#allocation6 + $0x28] sm:$0xff]  ;;  %v1955_v0 = vld [vmem:[#allocation6 + $0xc0] sm:$0xff]  ;;  %v2748_v14 = vpack.c.bf16 %v1944_v9, %v1943_v4 }
 0x78c   :  { %2727 = vmatprep.subr.bf16.mxu1 %v2726_v18  ;;  %v1956_v38 = vld [vmem:[#allocation6 + $0xc8] sm:$0xff]  ;;  %v1961_v18 = vld [vmem:[#allocation6 + $0xf0] sm:$0xff] }
 0x78d   :  { %v2738_v41 = vpack.c.bf16 %v1956_v38, %v1955_v0  ;;  %v2750_v25 = vpack.c.bf16 %v1962_v22, %v1961_v18  ;;  %v2077_v0 = vld [vmem:[%s3793_s7] ss:$0 sm:$0xff] }
 0x78e   :  { %2697 = vmatpush1.bf16.msra.mxu0 %v2696_v20  ;;  %v2732_v20 = vpack.c.bf16 %v1936_v12, %v1935_v11 }
 0x78f   :  { %2699 = vmatprep.subr.bf16.mxu0 %v2698_v28  ;;  %2729 = vmatpush3.bf16.msra.mxu1 %v2728_v7  ;;  %v1938_v28 = vld [vmem:[#allocation6 + $0x38] sm:$0xff]  ;;  %v2752_v7 = vpack.c.bf16 %v1946_v61, %v1945_v27 }
 0x790   :  { %2731 = vmatprep.subr.bf16.mxu1 %v2730_v8 }
 0x792   :  { %2701 = vmatpush1.bf16.msra.mxu0 %v2700_v39  ;;  %v2736_v39 = vpack.c.bf16 %v1938_v28, %v1937_v24 }
 0x793   :  { %2703 = vmatprep.subr.bf16.mxu0 %v2702_v43  ;;  %2733 = vmatpush3.bf16.msra.mxu1 %v2732_v20  ;;  %v1940_v43 = vld [vmem:[#allocation6 + $0x48] sm:$0xff] }
 0x794   :  { %2735 = vmatprep.subr.bf16.mxu1 %v2734_v21 }
 0x796   :  { %2705 = vmatpush1.bf16.msra.mxu0 %v2704_v33  ;;  %v2740_v33 = vpack.c.bf16 %v1940_v43, %v1939_v42 }
 0x797   :  { %2707 = vmatprep.subr.bf16.mxu0 %v2706_v59  ;;  %2737 = vmatpush3.bf16.msra.mxu1 %v2736_v39  ;;  %v1942_v59 = vld [vmem:[#allocation6 + $0x58] sm:$0xff] }
 0x798   :  { %2739 = vmatprep.subr.bf16.mxu1 %v2738_v41 }
 0x79a   :  { %2709 = vmatpush1.bf16.msra.mxu0 %v2708_v5  ;;  %v2744_v5 = vpack.c.bf16 %v1942_v59, %v1941_v45 }
 0x79b   :  { %2711 = vmatprep.subr.bf16.mxu0 %v2710_v50  ;;  %2741 = vmatpush3.bf16.msra.mxu1 %v2740_v33 }
 0x79c   :  { %2743 = vmatprep.subr.bf16.mxu1 %v2742_v52 }
 0x79e   :  { %2713 = vmatpush1.bf16.msra.mxu0 %v2712_v63 }
 0x79f   :  { %2715 = vmatprep.subr.bf16.mxu0 %v2714_v13  ;;  %2745 = vmatpush3.bf16.msra.mxu1 %v2744_v5 }
 0x7a0   :  { %2747 = vmatprep.subr.bf16.mxu1 %v2746_v55 }
 0x7a2   :  { %2717 = vmatpush1.bf16.msra.mxu0 %v2716_v23 }
 0x7a3   :  { %2719 = vmatprep.subr.bf16.mxu0 %v2718_v26  ;;  %2749 = vmatpush3.bf16.msra.mxu1 %v2748_v14 }
 0x7a4   :  { %2751 = vmatprep.subr.bf16.mxu1 %v2750_v25 }
 0x7a6   :  { %2721 = vmatpush1.bf16.msra.mxu0 %v2720_v36 }
 0x7a7   :  { %2753 = vmatpush3.bf16.msra.mxu1 %v2752_v7 }
 0x85c   :  { %v1710_v47 = vpop.f32.mrb[14].mxu0  ;;  %v1781_v50 = vpop.f32.mrb[14].mxu1 }
 0x85d   :  { %v2768_v53 = vadd.f32 %v1710_v47, %v3498_v35  ;;  %v1712_v56 = vpop.f32.mrb[15].mxu0  ;;  %v1783_v60 = vpop.f32.mrb[15].mxu1  ;;  %v2784_v16 = vadd.f32 %v1781_v50, %v3511_v1 }
 0x85e   :  { %v2769_v63 = vadd.f32 %v1712_v56, %v3502_v37  ;;  %v2785_v10 = vadd.f32 %v1783_v60, %v3507_v57 }
 0x85f   :  { %v2074_v3 = vmul.f32 -1.442695, %v2768_v53 }
 0x860   :  { %v2075_v6 = vmul.f32 -1.442695, %v2769_v63  ;;  %v2076_v13 = vmul.f32 -1.442695, %v2785_v10 }
 0x861   :  { %2940 = vpow2.f32 %v2074_v3 }
 0x862   :  { %2942 = vpow2.f32 %v2075_v6 }
 0x863   :  { %2944 = vpow2.f32 %v2076_v13 }
 0x864   :  { %2946 = vtanh.f32 %v2784_v16 }
 0x86b   :  { %v2941_v19 = vpop.eup %2940 }
 0x86c   :  { %v2943_v23 = vpop.eup %2942  ;;  %v1793_v26 = vadd.f32 1.0, %v2941_v19 }
 0x86d   :  { %v1799_v29 = vadd.f32 1.0, %v2943_v23  ;;  %v2945_v35 = vpop.eup %2944 }
 0x86e   :  { %2948 = vrcp.f32 %v1793_v26  ;;  %v2947_v32 = vpop.eup %2946  ;;  %v1806_v44 = vadd.f32 1.0, %v2945_v35 }
 0x86f   :  { %2950 = vrcp.f32 %v1799_v29 }
 0x870   :  { %2952 = vrcp.f32 %v1806_v44 }
 0x878   :  { %v2949_v37 = vpop.eup %2948 }
 0x879   :  { %v2951_v36 = vpop.eup %2950  ;;  %v1810_v40 = vmul.f32 %v2949_v37, %v2947_v32 }
 0x87a   :  { %v1809_v48 = vmul.f32 %v2951_v36, %v3764_v62  ;;  %v2953_v1 = vpop.eup %2952  ;;  %v1846_v62 = vld [vmem:[%s3791_s5] sm:$0x3] }
 0x87b   :  { %v1851_v8 = vrot.slane %v1846_v62, %v146_v31  ;;  %v1855_v11 = vrot.slane %v1846_v62, %v150_v34 }
 0x87c   :  { %v1811_v57 = vadd.f32 %v1810_v40, %v1809_v48 }
 0x87e   :  { %2954 = vtanh.f32 %v1811_v57 }
 0x888   :  { %v2955_v54 = vpop.eup %2954 }
 0x889   :  { %v1813_v58 = vmul.f32 %v2955_v54, %v2953_v1 }
 0x88b   :  { %1923 = vmatmul.mubr.f32.vlgmr.msra.gmra.mrb[16].mxu0 %v1813_v58 }
 0x95e   :  { %v1924_v12 = vpop.f32.mrb[16].mxu0 }
 0x95f   :  { %v1925_v15 = vadd.f32 %v1924_v12, %v1851_v8  ;;  %v1926_v17 = vpop.f32.mrb[17].mxu0 }
 0x960   :  { %v1927_v20 = vadd.f32 %v1926_v17, %v1855_v11 }
 0x961   :  { %v1929_v24 = vmax.f32 %v1925_v15, 0.0 }
 0x962   :  { %v1930_v21 = vmax.f32 %v1927_v20, 0.0 }
 0x964   :  { %2034 = vmatprep.mubr.f32.mxu1 %v1930_v21 }
 0x965   :  { %2035 = vmatmul.mubr.f32.vlgmr.msra.gmra.mrb[16].mxu1 %v1929_v24 }
 0xa38   :  { %v2111_v28 = vpop.f32.mrb[16].mxu1 }
 0xa39   :  { %v2112_v38 = vpop.f32.mrb[17].mxu1 }
 0xa3a   :  { %v2113_v39 = vadd.f32 %v2112_v38, %v2111_v28 }
 0xa3c   :  { %v2037_v41 = vadd.f32 %v2113_v39, %v2077_v0 }
 0xa3e   :  { %v2078_v31 = vmul.f32 -1.442695, %v2037_v41 }
 0xa40   :  { %2956 = vpow2.f32 %v2078_v31 }
 0xa4a   :  { %v2957_v30 = vpop.eup %2956 }
 0xa4b   :  { %v2043_v34 = vadd.f32 1.0, %v2957_v30 }
 0xa4d   :  { %2958 = vrcp.f32 %v2043_v34 }
 0xa57   :  { %v2959_v42 = vpop.eup %2958 }
 0xa58   :  { %2046 = vst [vmem:[%s3794_s8] sm:$0xff] %v2959_v42 }
 0xa59   :  { %2051 = vsyncpa [#allocation3], 1 }
 0xa5a   :  { %2052 = vsyncpa [#allocation5], 1 }

</bundles_post_ra>
